<compile_context>
chip_gen: v7x
topology: tpu7x:2x2x1
jax: 0.10.0
libtpu: 0.0.40
codegen_flags: <defaults>
</compile_context>

<pallas_src>
import functools
import math

import jax
import jax.numpy as jnp
from jax import lax
from jax.experimental import pallas as pl
from jax.experimental.pallas import tpu as pltpu

_LANE = 128


def _dc_ce_kernel(x_ref, y_ref, tp_ref, sp_ref, cnt_ref, ce_ref, *, hw):
    """One spatial tile of dice + CE accumulation.

    x_ref:   (B, C, TR, 128) logits in their native dtype (bf16/f16/f32)
    y_ref:   (B, TR, 128) int32 labels
    tp_ref / sp_ref / cnt_ref: (1, C, B, G, 128) f32 output-resident accumulators
    ce_ref:  (1, B, G, 128) f32 output-resident CE accumulator
    hw:      true (unpadded) number of pixels per image (static)
    """
    B, C, TR, _ = x_ref.shape
    G = tp_ref.shape[3]

    @pl.when(pl.program_id(1) == 0)
    def _init():
        tp_ref[...] = jnp.zeros_like(tp_ref)
        sp_ref[...] = jnp.zeros_like(sp_ref)
        cnt_ref[...] = jnp.zeros_like(cnt_ref)
        ce_ref[...] = jnp.zeros_like(ce_ref)

    # Validity mask from the *global* flat pixel index.  Handles the lane-pad tail,
    # the ragged last row-block and fully out-of-range duplicate blocks of the 2-core
    # split.  Every accumulation below goes through a where()-select keyed on this
    # mask (or on the masked labels), so garbage in partial blocks never propagates.
    blk = pl.program_id(0) * pl.num_programs(1) + pl.program_id(1)
    row0 = blk * TR
    r_idx = lax.broadcasted_iota(jnp.int32, (TR, _LANE), 0)
    l_idx = lax.broadcasted_iota(jnp.int32, (TR, _LANE), 1)
    valid = ((row0 + r_idx) * _LANE + l_idx < hw)[None]        # (1, TR, 128) bool

    y = jnp.where(valid, y_ref[...], -1)                       # (B, TR, 128) int32

    def rowsum(v):
        # (B, TR, 128) -> (B, G, 128): collapse only the row-group axis (vreg adds);
        # the 8->1 sublane and 128->1 lane reductions happen once, in the wrapper.
        return v.reshape(B, TR // G, G, _LANE).sum(axis=1)

    # --- softmax max over the (leading) class axis: unrolled, pure VPU -------------
    m = x_ref[:, 0]
    for c in range(1, C):
        m = jnp.maximum(m, x_ref[:, c])
    m = m.astype(jnp.float32)

    # --- denominator sum_c exp(x_c - m)  (>= 1, so log / reciprocal are safe) ------
    se = jnp.exp(x_ref[:, 0].astype(jnp.float32) - m)
    for c in range(1, C):
        se = se + jnp.exp(x_ref[:, c].astype(jnp.float32) - m)
    inv = pl.reciprocal(se, approx=True)       # EUP slot
    inv = inv * (2.0 - se * inv)               # one Newton step -> unbiased dice stats

    # --- per-class dice partials + CE target logit (exp recomputed: no f32 spills) --
    logit_t = jnp.zeros_like(m)
    for c in range(C):
        x_c = x_ref[:, c].astype(jnp.float32)
        p_c = jnp.exp(x_c - m) * inv
        hit = y == c
        tp_ref[0, c] += rowsum(jnp.where(hit, p_c, 0.0))
        sp_ref[0, c] += rowsum(jnp.where(valid, p_c, 0.0))
        cnt_ref[0, c] += rowsum(hit.astype(jnp.float32))
        logit_t = jnp.where(hit, x_c, logit_t)

    # --- cross-entropy partial: -log softmax at the target class --------------------
    ce_ref[0] += rowsum(jnp.where(valid, jnp.log(se) + m - logit_t, 0.0))


def _round_up(a, b):
    return ((a + b - 1) // b) * b


def dc_and_ce_loss(net_output, target, smooth=1.0, tile_rows=1024):
    """net_output: (B, C, *spatial) float logits; target: (B, 1, *spatial) or
    (B, *spatial) integer label map.  Returns the scalar DC_and_CE loss."""
    B, C = net_output.shape[0], net_output.shape[1]
    spatial = net_output.shape[2:]
    HW = int(math.prod(spatial))

    if target.ndim == net_output.ndim and target.shape[1] != 1:
        raise NotImplementedError("one-hot encoded targets are not supported")

    x = net_output.reshape(B, C, HW)
    if x.dtype not in (jnp.float32, jnp.bfloat16, jnp.float16):
        x = x.astype(jnp.float32)
    y = target.reshape(B, HW)
    if y.dtype != jnp.int32:
        y = y.astype(jnp.int32)

    # Pad only the sub-128 lane tail (metadata-free reshape otherwise); everything
    # else (ragged row tail, duplicate blocks) is masked inside the kernel.
    R = pl.cdiv(HW, _LANE)
    HW_pad = R * _LANE
    if HW_pad != HW:
        x = jnp.pad(x, ((0, 0), (0, 0), (0, HW_pad - HW)))
        y = jnp.pad(y, ((0, 0), (0, HW_pad - HW)))
    x = x.reshape(B, C, R, _LANE)
    y = y.reshape(B, R, _LANE)

    # ---- tile-size / VMEM sizing (v7x-safe: <= 75% of physical VMEM) ---------------
    xb = x.dtype.itemsize
    row_align = {1: 32, 2: 16, 4: 8}.get(xb, 8)
    try:
        vmem_cap = int(pltpu.get_tpu_info().vmem_capacity_bytes)
    except Exception:
        vmem_cap = 64 * 1024 * 1024                      # conservative (v7x) fallback
    budget = int(vmem_cap * 0.75) - (8 << 20)
    per_row = 2 * (B * C * _LANE * xb + B * _LANE * 4) + 12 * B * _LANE * 4
    tr_mem = max(row_align, budget // max(per_row, 1))

    if R <= row_align:
        TR = R                                           # single tiny full-extent block
    else:
        cap = max(row_align, (min(tile_rows, tr_mem) // row_align) * row_align)
        if R <= cap:
            # split into ~4 blocks: pipeline overlap + the 2-TensorCore grid split
            TR = min(cap, max(row_align, _round_up(pl.cdiv(R, 4), row_align)))
        else:
            TR = cap
    G = 8 if TR % 8 == 0 else TR
    NB = pl.cdiv(R, TR)
    NCHUNK = 2 if NB >= 2 else 1                         # leading "parallel" axis
    NI = pl.cdiv(NB, NCHUNK)

    def _blk(p, i):
        # clamp so the DMA never targets a fully out-of-range block; such duplicate
        # blocks are masked to zero contribution inside the kernel.
        return jnp.minimum(p * NI + i, NB - 1)

    blk_x = B * C * TR * _LANE * xb
    blk_y = B * TR * _LANE * 4
    out_bytes = (3 * C + 1) * B * G * _LANE * 4
    need = 2 * (blk_x + blk_y) + out_bytes + 12 * B * TR * _LANE * 4 + (4 << 20)
    vmem_limit = int(min(int(vmem_cap * 0.75), max(need, 32 << 20)))

    acc_shape = jax.ShapeDtypeStruct((NCHUNK, C, B, G, _LANE), jnp.float32)
    ce_shape = jax.ShapeDtypeStruct((NCHUNK, B, G, _LANE), jnp.float32)

    tp_p, sp_p, cnt_p, ce_p = pl.pallas_call(
        functools.partial(_dc_ce_kernel, hw=HW),
        out_shape=(acc_shape, acc_shape, acc_shape, ce_shape),
        grid=(NCHUNK, NI),
        in_specs=[
            pl.BlockSpec((B, C, TR, _LANE), lambda p, i: (0, 0, _blk(p, i), 0)),
            pl.BlockSpec((B, TR, _LANE), lambda p, i: (0, _blk(p, i), 0)),
        ],
        out_specs=(
            pl.BlockSpec((1, C, B, G, _LANE), lambda p, i: (p, 0, 0, 0, 0)),
            pl.BlockSpec((1, C, B, G, _LANE), lambda p, i: (p, 0, 0, 0, 0)),
            pl.BlockSpec((1, C, B, G, _LANE), lambda p, i: (p, 0, 0, 0, 0)),
            pl.BlockSpec((1, B, G, _LANE), lambda p, i: (p, 0, 0, 0)),
        ),
        compiler_params=pltpu.CompilerParams(
            dimension_semantics=("parallel", "arbitrary"),
            vmem_limit_bytes=vmem_limit,
        ),
    )(x, y)

    # ---- tiny finalize (per-core lane partials -> scalar loss) in plain JAX --------
    tp = jnp.sum(tp_p, axis=(0, 3, 4))                   # (C, B)
    sp = jnp.sum(sp_p, axis=(0, 3, 4))
    cnt = jnp.sum(cnt_p, axis=(0, 3, 4))
    # fp = sp - tp, fn = cnt - tp  =>  2*tp + fp + fn = sp + cnt
    dc = (2.0 * tp + smooth) / (sp + cnt + smooth)
    dc_loss = -jnp.mean(dc)
    ce_loss = jnp.sum(ce_p) / float(B * HW)
    return ce_loss + dc_loss


def _reference(net_output, target, smooth=1.0):
    """Pure-JAX reference matching DC_and_CE_loss defaults."""
    x = net_output.astype(jnp.float32)
    C = x.shape[1]
    spatial_axes = tuple(range(2, x.ndim))
    p = jax.nn.softmax(x, axis=1)
    tgt = target if target.ndim == x.ndim - 1 else target[:, 0]
    onehot = jax.nn.one_hot(tgt, C, axis=1, dtype=jnp.float32)
    tp = jnp.sum(p * onehot, axis=spatial_axes)
    fp = jnp.sum(p * (1.0 - onehot), axis=spatial_axes)
    fn = jnp.sum((1.0 - p) * onehot, axis=spatial_axes)
    dc = (2.0 * tp + smooth) / (2.0 * tp + fp + fn + smooth)
    dc_loss = -jnp.mean(dc)
    logp = jax.nn.log_softmax(x, axis=1)
    ce_loss = -jnp.mean(jnp.sum(logp * onehot, axis=1))
    return ce_loss + dc_loss


if __name__ == "__main__":
    key = jax.random.PRNGKey(0)
    kx, ky = jax.random.split(key)

    # Case 1: bf16 logits; 96*96 px -> 72 rows of 128, TR=32, 3 row-blocks split over
    # the 2-chunk "parallel" axis; exercises multi-step accumulation, the ragged row
    # tail mask and a clamped duplicate block.
    B, C, H, W = 2, 4, 96, 96
    logits = jax.random.normal(kx, (B, C, H, W), dtype=jnp.bfloat16)
    labels = jax.random.randint(ky, (B, 1, H, W), 0, C, dtype=jnp.int32)
    loss = jax.block_until_ready(dc_and_ce_loss(logits, labels))
    ref = _reference(logits, labels)
    assert abs(float(loss) - float(ref)) < 2e-3, (float(loss), float(ref))

    # Case 2: f32 logits with a ragged spatial size (480 px) exercising the sub-128
    # lane-tail padding and a single tiny full-extent block.
    B2, C2, H2, W2 = 2, 3, 24, 20
    x2 = jax.random.normal(kx, (B2, C2, H2, W2), dtype=jnp.float32)
    y2 = jax.random.randint(ky, (B2, 1, H2, W2), 0, C2, dtype=jnp.int32)
    loss2 = jax.block_until_ready(dc_and_ce_loss(x2, y2))
    ref2 = _reference(x2, y2)
    assert abs(float(loss2) - float(ref2)) < 2e-3, (float(loss2), float(ref2))

    print("KERNEL_OK")
</pallas_src>

<mosaic_0001>
module attributes {stable_mosaic.version = 11 : i64} {
  func.func @_dc_ce_kernel(%arg0: i32, %arg1: i32, %arg2: memref<2x4x32x128xbf16, #tpu.memory_space<vmem>>, %arg3: memref<2x32x128xi32, #tpu.memory_space<vmem>>, %arg4: memref<1x4x2x8x128xf32, #tpu.memory_space<vmem>>, %arg5: memref<1x4x2x8x128xf32, #tpu.memory_space<vmem>>, %arg6: memref<1x4x2x8x128xf32, #tpu.memory_space<vmem>>, %arg7: memref<1x2x8x128xf32, #tpu.memory_space<vmem>>) attributes {dimension_semantics = [#tpu.dimension_semantics<parallel>, #tpu.dimension_semantics<arbitrary>], iteration_bounds = array<i64: 2, 2>, scalar_prefetch = 0 : i64, scratch_operands = 0 : i64, tpu.core_type = #tpu.core_type<tc>, window_params = [{transform_indices = @transform_0, window_bounds = array<i64: 2, 4, 32, 128>}, {transform_indices = @transform_1, window_bounds = array<i64: 2, 32, 128>}, {transform_indices = @transform_2, window_bounds = array<i64: 1, 4, 2, 8, 128>}, {transform_indices = @transform_3, window_bounds = array<i64: 1, 4, 2, 8, 128>}, {transform_indices = @transform_4, window_bounds = array<i64: 1, 4, 2, 8, 128>}, {transform_indices = @transform_5, window_bounds = array<i64: 1, 2, 8, 128>}]} {
    %c0_i32 = arith.constant 0 : i32
    %0 = arith.cmpi eq, %arg1, %c0_i32 : i32
    %1 = arith.extui %0 : i1 to i32
    %c0_i32_0 = arith.constant 0 : i32
    %2 = arith.cmpi ne, %1, %c0_i32_0 : i32
    scf.if %2 {
      %cst_201 = arith.constant 0.000000e+00 : f32
      %241 = vector.broadcast %cst_201 : f32 to vector<1x4x2x8x128xf32>
      %c0_202 = arith.constant 0 : index
      %c0_203 = arith.constant 0 : index
      %c0_204 = arith.constant 0 : index
      %c0_205 = arith.constant 0 : index
      %c0_206 = arith.constant 0 : index
      %242 = vector.load %arg4[%c0_202, %c0_203, %c0_204, %c0_205, %c0_206] : memref<1x4x2x8x128xf32, #tpu.memory_space<vmem>>, vector<1x4x2x8x128xf32>
      tpu.vector_store %arg4[%c0_202, %c0_203, %c0_204, %c0_205, %c0_206], %241 {strides = array<i32>} : memref<1x4x2x8x128xf32, #tpu.memory_space<vmem>>, vector<1x4x2x8x128xf32>,
      %cst_207 = arith.constant 0.000000e+00 : f32
      %243 = vector.broadcast %cst_207 : f32 to vector<1x4x2x8x128xf32>
      %c0_208 = arith.constant 0 : index
      %c0_209 = arith.constant 0 : index
      %c0_210 = arith.constant 0 : index
      %c0_211 = arith.constant 0 : index
      %c0_212 = arith.constant 0 : index
      %244 = vector.load %arg5[%c0_208, %c0_209, %c0_210, %c0_211, %c0_212] : memref<1x4x2x8x128xf32, #tpu.memory_space<vmem>>, vector<1x4x2x8x128xf32>
      tpu.vector_store %arg5[%c0_208, %c0_209, %c0_210, %c0_211, %c0_212], %243 {strides = array<i32>} : memref<1x4x2x8x128xf32, #tpu.memory_space<vmem>>, vector<1x4x2x8x128xf32>,
      %cst_213 = arith.constant 0.000000e+00 : f32
      %245 = vector.broadcast %cst_213 : f32 to vector<1x4x2x8x128xf32>
      %c0_214 = arith.constant 0 : index
      %c0_215 = arith.constant 0 : index
      %c0_216 = arith.constant 0 : index
      %c0_217 = arith.constant 0 : index
      %c0_218 = arith.constant 0 : index
      %246 = vector.load %arg6[%c0_214, %c0_215, %c0_216, %c0_217, %c0_218] : memref<1x4x2x8x128xf32, #tpu.memory_space<vmem>>, vector<1x4x2x8x128xf32>
      tpu.vector_store %arg6[%c0_214, %c0_215, %c0_216, %c0_217, %c0_218], %245 {strides = array<i32>} : memref<1x4x2x8x128xf32, #tpu.memory_space<vmem>>, vector<1x4x2x8x128xf32>,
      %cst_219 = arith.constant 0.000000e+00 : f32
      %247 = vector.broadcast %cst_219 : f32 to vector<1x2x8x128xf32>
      %c0_220 = arith.constant 0 : index
      %c0_221 = arith.constant 0 : index
      %c0_222 = arith.constant 0 : index
      %c0_223 = arith.constant 0 : index
      %248 = vector.load %arg7[%c0_220, %c0_221, %c0_222, %c0_223] : memref<1x2x8x128xf32, #tpu.memory_space<vmem>>, vector<1x2x8x128xf32>
      tpu.vector_store %arg7[%c0_220, %c0_221, %c0_222, %c0_223], %247 {strides = array<i32>} : memref<1x2x8x128xf32, #tpu.memory_space<vmem>>, vector<1x2x8x128xf32>,
    } else {
    }
    %c2_i32 = arith.constant 2 : i32
    %3 = arith.muli %arg0, %c2_i32 : i32
    %4 = arith.addi %3, %arg1 : i32
    %c32_i32 = arith.constant 32 : i32
    %5 = arith.muli %4, %c32_i32 : i32
    %6 = tpu.iota {dimensions = array<i32: 0>} : vector<32x128xi32>
    %7 = tpu.iota {dimensions = array<i32: 1>} : vector<32x128xi32>
    %8 = vector.broadcast %5 : i32 to vector<32x128xi32>
    %9 = arith.addi %8, %6 : vector<32x128xi32>
    %c128_i32 = arith.constant 128 : i32
    %10 = vector.broadcast %c128_i32 : i32 to vector<32x128xi32>
    %11 = arith.muli %9, %10 : vector<32x128xi32>
    %12 = arith.addi %11, %7 : vector<32x128xi32>
    %c9216_i32 = arith.constant 9216 : i32
    %13 = vector.broadcast %c9216_i32 : i32 to vector<32x128xi32>
    %14 = arith.cmpi slt, %12, %13 : vector<32x128xi32>
    %15 = vector.shape_cast %14 : vector<32x128xi1> to vector<1x32x128xi1>
    %c0 = arith.constant 0 : index
    %c0_1 = arith.constant 0 : index
    %c0_2 = arith.constant 0 : index
    %16 = vector.load %arg3[%c0, %c0_1, %c0_2] : memref<2x32x128xi32, #tpu.memory_space<vmem>>, vector<2x32x128xi32>
    %c-1_i32 = arith.constant -1 : i32
    %17 = vector.shape_cast %15 : vector<1x32x128xi1> to vector<1x32x128xi1>
    %18 = vector.broadcast %17 : vector<1x32x128xi1> to vector<2x32x128xi1>
    %19 = vector.broadcast %c-1_i32 : i32 to vector<2x32x128xi32>
    %20 = arith.select %18, %16, %19 : vector<2x32x128xi1>, vector<2x32x128xi32>
    %c0_3 = arith.constant 0 : index
    %c0_4 = arith.constant 0 : index
    %c0_5 = arith.constant 0 : index
    %c0_6 = arith.constant 0 : index
    %21 = vector.load %arg2[%c0_3, %c0_4, %c0_5, %c0_6] : memref<2x4x32x128xbf16, #tpu.memory_space<vmem>>, vector<2x1x32x128xbf16>
    %22 = vector.shape_cast %21 : vector<2x1x32x128xbf16> to vector<2x32x128xbf16>
    %c0_7 = arith.constant 0 : index
    %c1 = arith.constant 1 : index
    %c0_8 = arith.constant 0 : index
    %c0_9 = arith.constant 0 : index
    %23 = vector.load %arg2[%c0_7, %c1, %c0_8, %c0_9] : memref<2x4x32x128xbf16, #tpu.memory_space<vmem>>, vector<2x1x32x128xbf16>
    %24 = vector.shape_cast %23 : vector<2x1x32x128xbf16> to vector<2x32x128xbf16>
    %25 = arith.maximumf %22, %24 : vector<2x32x128xbf16>
    %c0_10 = arith.constant 0 : index
    %c2 = arith.constant 2 : index
    %c0_11 = arith.constant 0 : index
    %c0_12 = arith.constant 0 : index
    %26 = vector.load %arg2[%c0_10, %c2, %c0_11, %c0_12] : memref<2x4x32x128xbf16, #tpu.memory_space<vmem>>, vector<2x1x32x128xbf16>
    %27 = vector.shape_cast %26 : vector<2x1x32x128xbf16> to vector<2x32x128xbf16>
    %28 = arith.maximumf %25, %27 : vector<2x32x128xbf16>
    %c0_13 = arith.constant 0 : index
    %c3 = arith.constant 3 : index
    %c0_14 = arith.constant 0 : index
    %c0_15 = arith.constant 0 : index
    %29 = vector.load %arg2[%c0_13, %c3, %c0_14, %c0_15] : memref<2x4x32x128xbf16, #tpu.memory_space<vmem>>, vector<2x1x32x128xbf16>
    %30 = vector.shape_cast %29 : vector<2x1x32x128xbf16> to vector<2x32x128xbf16>
    %31 = arith.maximumf %28, %30 : vector<2x32x128xbf16>
    %32 = arith.extf %31 : vector<2x32x128xbf16> to vector<2x32x128xf32>
    %c0_16 = arith.constant 0 : index
    %c0_17 = arith.constant 0 : index
    %c0_18 = arith.constant 0 : index
    %c0_19 = arith.constant 0 : index
    %33 = vector.load %arg2[%c0_16, %c0_17, %c0_18, %c0_19] : memref<2x4x32x128xbf16, #tpu.memory_space<vmem>>, vector<2x1x32x128xbf16>
    %34 = vector.shape_cast %33 : vector<2x1x32x128xbf16> to vector<2x32x128xbf16>
    %35 = arith.extf %34 : vector<2x32x128xbf16> to vector<2x32x128xf32>
    %36 = arith.subf %35, %32 : vector<2x32x128xf32>
    %37 = math.exp %36 : vector<2x32x128xf32>
    %c0_20 = arith.constant 0 : index
    %c1_21 = arith.constant 1 : index
    %c0_22 = arith.constant 0 : index
    %c0_23 = arith.constant 0 : index
    %38 = vector.load %arg2[%c0_20, %c1_21, %c0_22, %c0_23] : memref<2x4x32x128xbf16, #tpu.memory_space<vmem>>, vector<2x1x32x128xbf16>
    %39 = vector.shape_cast %38 : vector<2x1x32x128xbf16> to vector<2x32x128xbf16>
    %40 = arith.extf %39 : vector<2x32x128xbf16> to vector<2x32x128xf32>
    %41 = arith.subf %40, %32 : vector<2x32x128xf32>
    %42 = math.exp %41 : vector<2x32x128xf32>
    %43 = arith.addf %37, %42 : vector<2x32x128xf32>
    %c0_24 = arith.constant 0 : index
    %c2_25 = arith.constant 2 : index
    %c0_26 = arith.constant 0 : index
    %c0_27 = arith.constant 0 : index
    %44 = vector.load %arg2[%c0_24, %c2_25, %c0_26, %c0_27] : memref<2x4x32x128xbf16, #tpu.memory_space<vmem>>, vector<2x1x32x128xbf16>
    %45 = vector.shape_cast %44 : vector<2x1x32x128xbf16> to vector<2x32x128xbf16>
    %46 = arith.extf %45 : vector<2x32x128xbf16> to vector<2x32x128xf32>
    %47 = arith.subf %46, %32 : vector<2x32x128xf32>
    %48 = math.exp %47 : vector<2x32x128xf32>
    %49 = arith.addf %43, %48 : vector<2x32x128xf32>
    %c0_28 = arith.constant 0 : index
    %c3_29 = arith.constant 3 : index
    %c0_30 = arith.constant 0 : index
    %c0_31 = arith.constant 0 : index
    %50 = vector.load %arg2[%c0_28, %c3_29, %c0_30, %c0_31] : memref<2x4x32x128xbf16, #tpu.memory_space<vmem>>, vector<2x1x32x128xbf16>
    %51 = vector.shape_cast %50 : vector<2x1x32x128xbf16> to vector<2x32x128xbf16>
    %52 = arith.extf %51 : vector<2x32x128xbf16> to vector<2x32x128xf32>
    %53 = arith.subf %52, %32 : vector<2x32x128xf32>
    %54 = math.exp %53 : vector<2x32x128xf32>
    %55 = arith.addf %49, %54 : vector<2x32x128xf32>
    %56 = tpu.reciprocal %55 {approx = true} : vector<2x32x128xf32> -> vector<2x32x128xf32>
    %57 = arith.mulf %55, %56 : vector<2x32x128xf32>
    %cst = arith.constant 2.000000e+00 : f32
    %58 = vector.broadcast %cst : f32 to vector<2x32x128xf32>
    %59 = arith.subf %58, %57 : vector<2x32x128xf32>
    %60 = arith.mulf %56, %59 : vector<2x32x128xf32>
    %cst_32 = arith.constant 0.000000e+00 : f32
    %61 = vector.broadcast %cst_32 : f32 to vector<2x32x128xf32>
    %c0_33 = arith.constant 0 : index
    %c0_34 = arith.constant 0 : index
    %c0_35 = arith.constant 0 : index
    %c0_36 = arith.constant 0 : index
    %62 = vector.load %arg2[%c0_33, %c0_34, %c0_35, %c0_36] : memref<2x4x32x128xbf16, #tpu.memory_space<vmem>>, vector<2x1x32x128xbf16>
    %63 = vector.shape_cast %62 : vector<2x1x32x128xbf16> to vector<2x32x128xbf16>
    %64 = arith.extf %63 : vector<2x32x128xbf16> to vector<2x32x128xf32>
    %65 = arith.subf %64, %32 : vector<2x32x128xf32>
    %66 = math.exp %65 : vector<2x32x128xf32>
    %67 = arith.mulf %66, %60 : vector<2x32x128xf32>
    %c0_i32_37 = arith.constant 0 : i32
    %68 = vector.broadcast %c0_i32_37 : i32 to vector<2x32x128xi32>
    %69 = arith.cmpi eq, %20, %68 : vector<2x32x128xi32>
    %c0_38 = arith.constant 0 : index
    %c0_39 = arith.constant 0 : index
    %c0_40 = arith.constant 0 : index
    %c0_41 = arith.constant 0 : index
    %c0_42 = arith.constant 0 : index
    %70 = vector.load %arg4[%c0_38, %c0_39, %c0_40, %c0_41, %c0_42] : memref<1x4x2x8x128xf32, #tpu.memory_space<vmem>>, vector<1x1x2x8x128xf32>
    %71 = vector.shape_cast %70 : vector<1x1x2x8x128xf32> to vector<2x8x128xf32>
    %cst_43 = arith.constant 0.000000e+00 : f32
    %72 = vector.broadcast %cst_43 : f32 to vector<2x32x128xf32>
    %73 = arith.select %69, %67, %72 : vector<2x32x128xi1>, vector<2x32x128xf32>
    %74 = vector.shape_cast %73 : vector<2x32x128xf32> to vector<2x4x8x128xf32>
    %cst_44 = arith.constant dense<0.000000e+00> : vector<2x8x128xf32>
    %75 = vector.multi_reduction <add>, %74, %cst_44 [1] : vector<2x4x8x128xf32> to vector<2x8x128xf32>
    %76 = arith.addf %71, %75 : vector<2x8x128xf32>
    %c0_45 = arith.constant 0 : index
    %c0_46 = arith.constant 0 : index
    %c0_47 = arith.constant 0 : index
    %c0_48 = arith.constant 0 : index
    %c0_49 = arith.constant 0 : index
    %77 = vector.load %arg4[%c0_45, %c0_46, %c0_47, %c0_48, %c0_49] : memref<1x4x2x8x128xf32, #tpu.memory_space<vmem>>, vector<1x1x2x8x128xf32>
    %78 = vector.shape_cast %77 : vector<1x1x2x8x128xf32> to vector<2x8x128xf32>
    %79 = vector.shape_cast %76 : vector<2x8x128xf32> to vector<1x1x2x8x128xf32>
    tpu.vector_store %arg4[%c0_45, %c0_46, %c0_47, %c0_48, %c0_49], %79 {strides = array<i32>} : memref<1x4x2x8x128xf32, #tpu.memory_space<vmem>>, vector<1x1x2x8x128xf32>,
    %c0_50 = arith.constant 0 : index
    %c0_51 = arith.constant 0 : index
    %c0_52 = arith.constant 0 : index
    %c0_53 = arith.constant 0 : index
    %c0_54 = arith.constant 0 : index
    %80 = vector.load %arg5[%c0_50, %c0_51, %c0_52, %c0_53, %c0_54] : memref<1x4x2x8x128xf32, #tpu.memory_space<vmem>>, vector<1x1x2x8x128xf32>
    %81 = vector.shape_cast %80 : vector<1x1x2x8x128xf32> to vector<2x8x128xf32>
    %cst_55 = arith.constant 0.000000e+00 : f32
    %82 = vector.shape_cast %15 : vector<1x32x128xi1> to vector<1x32x128xi1>
    %83 = vector.broadcast %82 : vector<1x32x128xi1> to vector<2x32x128xi1>
    %84 = vector.broadcast %cst_55 : f32 to vector<2x32x128xf32>
    %85 = arith.select %83, %67, %84 : vector<2x32x128xi1>, vector<2x32x128xf32>
    %86 = vector.shape_cast %85 : vector<2x32x128xf32> to vector<2x4x8x128xf32>
    %cst_56 = arith.constant dense<0.000000e+00> : vector<2x8x128xf32>
    %87 = vector.multi_reduction <add>, %86, %cst_56 [1] : vector<2x4x8x128xf32> to vector<2x8x128xf32>
    %88 = arith.addf %81, %87 : vector<2x8x128xf32>
    %c0_57 = arith.constant 0 : index
    %c0_58 = arith.constant 0 : index
    %c0_59 = arith.constant 0 : index
    %c0_60 = arith.constant 0 : index
    %c0_61 = arith.constant 0 : index
    %89 = vector.load %arg5[%c0_57, %c0_58, %c0_59, %c0_60, %c0_61] : memref<1x4x2x8x128xf32, #tpu.memory_space<vmem>>, vector<1x1x2x8x128xf32>
    %90 = vector.shape_cast %89 : vector<1x1x2x8x128xf32> to vector<2x8x128xf32>
    %91 = vector.shape_cast %88 : vector<2x8x128xf32> to vector<1x1x2x8x128xf32>
    tpu.vector_store %arg5[%c0_57, %c0_58, %c0_59, %c0_60, %c0_61], %91 {strides = array<i32>} : memref<1x4x2x8x128xf32, #tpu.memory_space<vmem>>, vector<1x1x2x8x128xf32>,
    %c0_62 = arith.constant 0 : index
    %c0_63 = arith.constant 0 : index
    %c0_64 = arith.constant 0 : index
    %c0_65 = arith.constant 0 : index
    %c0_66 = arith.constant 0 : index
    %92 = vector.load %arg6[%c0_62, %c0_63, %c0_64, %c0_65, %c0_66] : memref<1x4x2x8x128xf32, #tpu.memory_space<vmem>>, vector<1x1x2x8x128xf32>
    %93 = vector.shape_cast %92 : vector<1x1x2x8x128xf32> to vector<2x8x128xf32>
    %94 = arith.extui %69 : vector<2x32x128xi1> to vector<2x32x128xi32>
    %95 = arith.sitofp %94 : vector<2x32x128xi32> to vector<2x32x128xf32>
    %96 = vector.shape_cast %95 : vector<2x32x128xf32> to vector<2x4x8x128xf32>
    %cst_67 = arith.constant dense<0.000000e+00> : vector<2x8x128xf32>
    %97 = vector.multi_reduction <add>, %96, %cst_67 [1] : vector<2x4x8x128xf32> to vector<2x8x128xf32>
    %98 = arith.addf %93, %97 : vector<2x8x128xf32>
    %c0_68 = arith.constant 0 : index
    %c0_69 = arith.constant 0 : index
    %c0_70 = arith.constant 0 : index
    %c0_71 = arith.constant 0 : index
    %c0_72 = arith.constant 0 : index
    %99 = vector.load %arg6[%c0_68, %c0_69, %c0_70, %c0_71, %c0_72] : memref<1x4x2x8x128xf32, #tpu.memory_space<vmem>>, vector<1x1x2x8x128xf32>
    %100 = vector.shape_cast %99 : vector<1x1x2x8x128xf32> to vector<2x8x128xf32>
    %101 = vector.shape_cast %98 : vector<2x8x128xf32> to vector<1x1x2x8x128xf32>
    tpu.vector_store %arg6[%c0_68, %c0_69, %c0_70, %c0_71, %c0_72], %101 {strides = array<i32>} : memref<1x4x2x8x128xf32, #tpu.memory_space<vmem>>, vector<1x1x2x8x128xf32>,
    %102 = arith.select %69, %64, %61 : vector<2x32x128xi1>, vector<2x32x128xf32>
    %c0_73 = arith.constant 0 : index
    %c1_74 = arith.constant 1 : index
    %c0_75 = arith.constant 0 : index
    %c0_76 = arith.constant 0 : index
    %103 = vector.load %arg2[%c0_73, %c1_74, %c0_75, %c0_76] : memref<2x4x32x128xbf16, #tpu.memory_space<vmem>>, vector<2x1x32x128xbf16>
    %104 = vector.shape_cast %103 : vector<2x1x32x128xbf16> to vector<2x32x128xbf16>
    %105 = arith.extf %104 : vector<2x32x128xbf16> to vector<2x32x128xf32>
    %106 = arith.subf %105, %32 : vector<2x32x128xf32>
    %107 = math.exp %106 : vector<2x32x128xf32>
    %108 = arith.mulf %107, %60 : vector<2x32x128xf32>
    %c1_i32 = arith.constant 1 : i32
    %109 = vector.broadcast %c1_i32 : i32 to vector<2x32x128xi32>
    %110 = arith.cmpi eq, %20, %109 : vector<2x32x128xi32>
    %c0_77 = arith.constant 0 : index
    %c1_78 = arith.constant 1 : index
    %c0_79 = arith.constant 0 : index
    %c0_80 = arith.constant 0 : index
    %c0_81 = arith.constant 0 : index
    %111 = vector.load %arg4[%c0_77, %c1_78, %c0_79, %c0_80, %c0_81] : memref<1x4x2x8x128xf32, #tpu.memory_space<vmem>>, vector<1x1x2x8x128xf32>
    %112 = vector.shape_cast %111 : vector<1x1x2x8x128xf32> to vector<2x8x128xf32>
    %cst_82 = arith.constant 0.000000e+00 : f32
    %113 = vector.broadcast %cst_82 : f32 to vector<2x32x128xf32>
    %114 = arith.select %110, %108, %113 : vector<2x32x128xi1>, vector<2x32x128xf32>
    %115 = vector.shape_cast %114 : vector<2x32x128xf32> to vector<2x4x8x128xf32>
    %cst_83 = arith.constant dense<0.000000e+00> : vector<2x8x128xf32>
    %116 = vector.multi_reduction <add>, %115, %cst_83 [1] : vector<2x4x8x128xf32> to vector<2x8x128xf32>
    %117 = arith.addf %112, %116 : vector<2x8x128xf32>
    %c0_84 = arith.constant 0 : index
    %c1_85 = arith.constant 1 : index
    %c0_86 = arith.constant 0 : index
    %c0_87 = arith.constant 0 : index
    %c0_88 = arith.constant 0 : index
    %118 = vector.load %arg4[%c0_84, %c1_85, %c0_86, %c0_87, %c0_88] : memref<1x4x2x8x128xf32, #tpu.memory_space<vmem>>, vector<1x1x2x8x128xf32>
    %119 = vector.shape_cast %118 : vector<1x1x2x8x128xf32> to vector<2x8x128xf32>
    %120 = vector.shape_cast %117 : vector<2x8x128xf32> to vector<1x1x2x8x128xf32>
    tpu.vector_store %arg4[%c0_84, %c1_85, %c0_86, %c0_87, %c0_88], %120 {strides = array<i32>} : memref<1x4x2x8x128xf32, #tpu.memory_space<vmem>>, vector<1x1x2x8x128xf32>,
    %c0_89 = arith.constant 0 : index
    %c1_90 = arith.constant 1 : index
    %c0_91 = arith.constant 0 : index
    %c0_92 = arith.constant 0 : index
    %c0_93 = arith.constant 0 : index
    %121 = vector.load %arg5[%c0_89, %c1_90, %c0_91, %c0_92, %c0_93] : memref<1x4x2x8x128xf32, #tpu.memory_space<vmem>>, vector<1x1x2x8x128xf32>
    %122 = vector.shape_cast %121 : vector<1x1x2x8x128xf32> to vector<2x8x128xf32>
    %cst_94 = arith.constant 0.000000e+00 : f32
    %123 = vector.shape_cast %15 : vector<1x32x128xi1> to vector<1x32x128xi1>
    %124 = vector.broadcast %123 : vector<1x32x128xi1> to vector<2x32x128xi1>
    %125 = vector.broadcast %cst_94 : f32 to vector<2x32x128xf32>
    %126 = arith.select %124, %108, %125 : vector<2x32x128xi1>, vector<2x32x128xf32>
    %127 = vector.shape_cast %126 : vector<2x32x128xf32> to vector<2x4x8x128xf32>
    %cst_95 = arith.constant dense<0.000000e+00> : vector<2x8x128xf32>
    %128 = vector.multi_reduction <add>, %127, %cst_95 [1] : vector<2x4x8x128xf32> to vector<2x8x128xf32>
    %129 = arith.addf %122, %128 : vector<2x8x128xf32>
    %c0_96 = arith.constant 0 : index
    %c1_97 = arith.constant 1 : index
    %c0_98 = arith.constant 0 : index
    %c0_99 = arith.constant 0 : index
    %c0_100 = arith.constant 0 : index
    %130 = vector.load %arg5[%c0_96, %c1_97, %c0_98, %c0_99, %c0_100] : memref<1x4x2x8x128xf32, #tpu.memory_space<vmem>>, vector<1x1x2x8x128xf32>
    %131 = vector.shape_cast %130 : vector<1x1x2x8x128xf32> to vector<2x8x128xf32>
    %132 = vector.shape_cast %129 : vector<2x8x128xf32> to vector<1x1x2x8x128xf32>
    tpu.vector_store %arg5[%c0_96, %c1_97, %c0_98, %c0_99, %c0_100], %132 {strides = array<i32>} : memref<1x4x2x8x128xf32, #tpu.memory_space<vmem>>, vector<1x1x2x8x128xf32>,
    %c0_101 = arith.constant 0 : index
    %c1_102 = arith.constant 1 : index
    %c0_103 = arith.constant 0 : index
    %c0_104 = arith.constant 0 : index
    %c0_105 = arith.constant 0 : index
    %133 = vector.load %arg6[%c0_101, %c1_102, %c0_103, %c0_104, %c0_105] : memref<1x4x2x8x128xf32, #tpu.memory_space<vmem>>, vector<1x1x2x8x128xf32>
    %134 = vector.shape_cast %133 : vector<1x1x2x8x128xf32> to vector<2x8x128xf32>
    %135 = arith.extui %110 : vector<2x32x128xi1> to vector<2x32x128xi32>
    %136 = arith.sitofp %135 : vector<2x32x128xi32> to vector<2x32x128xf32>
    %137 = vector.shape_cast %136 : vector<2x32x128xf32> to vector<2x4x8x128xf32>
    %cst_106 = arith.constant dense<0.000000e+00> : vector<2x8x128xf32>
    %138 = vector.multi_reduction <add>, %137, %cst_106 [1] : vector<2x4x8x128xf32> to vector<2x8x128xf32>
    %139 = arith.addf %134, %138 : vector<2x8x128xf32>
    %c0_107 = arith.constant 0 : index
    %c1_108 = arith.constant 1 : index
    %c0_109 = arith.constant 0 : index
    %c0_110 = arith.constant 0 : index
    %c0_111 = arith.constant 0 : index
    %140 = vector.load %arg6[%c0_107, %c1_108, %c0_109, %c0_110, %c0_111] : memref<1x4x2x8x128xf32, #tpu.memory_space<vmem>>, vector<1x1x2x8x128xf32>
    %141 = vector.shape_cast %140 : vector<1x1x2x8x128xf32> to vector<2x8x128xf32>
    %142 = vector.shape_cast %139 : vector<2x8x128xf32> to vector<1x1x2x8x128xf32>
    tpu.vector_store %arg6[%c0_107, %c1_108, %c0_109, %c0_110, %c0_111], %142 {strides = array<i32>} : memref<1x4x2x8x128xf32, #tpu.memory_space<vmem>>, vector<1x1x2x8x128xf32>,
    %143 = arith.select %110, %105, %102 : vector<2x32x128xi1>, vector<2x32x128xf32>
    %c0_112 = arith.constant 0 : index
    %c2_113 = arith.constant 2 : index
    %c0_114 = arith.constant 0 : index
    %c0_115 = arith.constant 0 : index
    %144 = vector.load %arg2[%c0_112, %c2_113, %c0_114, %c0_115] : memref<2x4x32x128xbf16, #tpu.memory_space<vmem>>, vector<2x1x32x128xbf16>
    %145 = vector.shape_cast %144 : vector<2x1x32x128xbf16> to vector<2x32x128xbf16>
    %146 = arith.extf %145 : vector<2x32x128xbf16> to vector<2x32x128xf32>
    %147 = arith.subf %146, %32 : vector<2x32x128xf32>
    %148 = math.exp %147 : vector<2x32x128xf32>
    %149 = arith.mulf %148, %60 : vector<2x32x128xf32>
    %c2_i32_116 = arith.constant 2 : i32
    %150 = vector.broadcast %c2_i32_116 : i32 to vector<2x32x128xi32>
    %151 = arith.cmpi eq, %20, %150 : vector<2x32x128xi32>
    %c0_117 = arith.constant 0 : index
    %c2_118 = arith.constant 2 : index
    %c0_119 = arith.constant 0 : index
    %c0_120 = arith.constant 0 : index
    %c0_121 = arith.constant 0 : index
    %152 = vector.load %arg4[%c0_117, %c2_118, %c0_119, %c0_120, %c0_121] : memref<1x4x2x8x128xf32, #tpu.memory_space<vmem>>, vector<1x1x2x8x128xf32>
    %153 = vector.shape_cast %152 : vector<1x1x2x8x128xf32> to vector<2x8x128xf32>
    %cst_122 = arith.constant 0.000000e+00 : f32
    %154 = vector.broadcast %cst_122 : f32 to vector<2x32x128xf32>
    %155 = arith.select %151, %149, %154 : vector<2x32x128xi1>, vector<2x32x128xf32>
    %156 = vector.shape_cast %155 : vector<2x32x128xf32> to vector<2x4x8x128xf32>
    %cst_123 = arith.constant dense<0.000000e+00> : vector<2x8x128xf32>
    %157 = vector.multi_reduction <add>, %156, %cst_123 [1] : vector<2x4x8x128xf32> to vector<2x8x128xf32>
    %158 = arith.addf %153, %157 : vector<2x8x128xf32>
    %c0_124 = arith.constant 0 : index
    %c2_125 = arith.constant 2 : index
    %c0_126 = arith.constant 0 : index
    %c0_127 = arith.constant 0 : index
    %c0_128 = arith.constant 0 : index
    %159 = vector.load %arg4[%c0_124, %c2_125, %c0_126, %c0_127, %c0_128] : memref<1x4x2x8x128xf32, #tpu.memory_space<vmem>>, vector<1x1x2x8x128xf32>
    %160 = vector.shape_cast %159 : vector<1x1x2x8x128xf32> to vector<2x8x128xf32>
    %161 = vector.shape_cast %158 : vector<2x8x128xf32> to vector<1x1x2x8x128xf32>
    tpu.vector_store %arg4[%c0_124, %c2_125, %c0_126, %c0_127, %c0_128], %161 {strides = array<i32>} : memref<1x4x2x8x128xf32, #tpu.memory_space<vmem>>, vector<1x1x2x8x128xf32>,
    %c0_129 = arith.constant 0 : index
    %c2_130 = arith.constant 2 : index
    %c0_131 = arith.constant 0 : index
    %c0_132 = arith.constant 0 : index
    %c0_133 = arith.constant 0 : index
    %162 = vector.load %arg5[%c0_129, %c2_130, %c0_131, %c0_132, %c0_133] : memref<1x4x2x8x128xf32, #tpu.memory_space<vmem>>, vector<1x1x2x8x128xf32>
    %163 = vector.shape_cast %162 : vector<1x1x2x8x128xf32> to vector<2x8x128xf32>
    %cst_134 = arith.constant 0.000000e+00 : f32
    %164 = vector.shape_cast %15 : vector<1x32x128xi1> to vector<1x32x128xi1>
    %165 = vector.broadcast %164 : vector<1x32x128xi1> to vector<2x32x128xi1>
    %166 = vector.broadcast %cst_134 : f32 to vector<2x32x128xf32>
    %167 = arith.select %165, %149, %166 : vector<2x32x128xi1>, vector<2x32x128xf32>
    %168 = vector.shape_cast %167 : vector<2x32x128xf32> to vector<2x4x8x128xf32>
    %cst_135 = arith.constant dense<0.000000e+00> : vector<2x8x128xf32>
    %169 = vector.multi_reduction <add>, %168, %cst_135 [1] : vector<2x4x8x128xf32> to vector<2x8x128xf32>
    %170 = arith.addf %163, %169 : vector<2x8x128xf32>
    %c0_136 = arith.constant 0 : index
    %c2_137 = arith.constant 2 : index
    %c0_138 = arith.constant 0 : index
    %c0_139 = arith.constant 0 : index
    %c0_140 = arith.constant 0 : index
    %171 = vector.load %arg5[%c0_136, %c2_137, %c0_138, %c0_139, %c0_140] : memref<1x4x2x8x128xf32, #tpu.memory_space<vmem>>, vector<1x1x2x8x128xf32>
    %172 = vector.shape_cast %171 : vector<1x1x2x8x128xf32> to vector<2x8x128xf32>
    %173 = vector.shape_cast %170 : vector<2x8x128xf32> to vector<1x1x2x8x128xf32>
    tpu.vector_store %arg5[%c0_136, %c2_137, %c0_138, %c0_139, %c0_140], %173 {strides = array<i32>} : memref<1x4x2x8x128xf32, #tpu.memory_space<vmem>>, vector<1x1x2x8x128xf32>,
    %c0_141 = arith.constant 0 : index
    %c2_142 = arith.constant 2 : index
    %c0_143 = arith.constant 0 : index
    %c0_144 = arith.constant 0 : index
    %c0_145 = arith.constant 0 : index
    %174 = vector.load %arg6[%c0_141, %c2_142, %c0_143, %c0_144, %c0_145] : memref<1x4x2x8x128xf32, #tpu.memory_space<vmem>>, vector<1x1x2x8x128xf32>
    %175 = vector.shape_cast %174 : vector<1x1x2x8x128xf32> to vector<2x8x128xf32>
    %176 = arith.extui %151 : vector<2x32x128xi1> to vector<2x32x128xi32>
    %177 = arith.sitofp %176 : vector<2x32x128xi32> to vector<2x32x128xf32>
    %178 = vector.shape_cast %177 : vector<2x32x128xf32> to vector<2x4x8x128xf32>
    %cst_146 = arith.constant dense<0.000000e+00> : vector<2x8x128xf32>
    %179 = vector.multi_reduction <add>, %178, %cst_146 [1] : vector<2x4x8x128xf32> to vector<2x8x128xf32>
    %180 = arith.addf %175, %179 : vector<2x8x128xf32>
    %c0_147 = arith.constant 0 : index
    %c2_148 = arith.constant 2 : index
    %c0_149 = arith.constant 0 : index
    %c0_150 = arith.constant 0 : index
    %c0_151 = arith.constant 0 : index
    %181 = vector.load %arg6[%c0_147, %c2_148, %c0_149, %c0_150, %c0_151] : memref<1x4x2x8x128xf32, #tpu.memory_space<vmem>>, vector<1x1x2x8x128xf32>
    %182 = vector.shape_cast %181 : vector<1x1x2x8x128xf32> to vector<2x8x128xf32>
    %183 = vector.shape_cast %180 : vector<2x8x128xf32> to vector<1x1x2x8x128xf32>
    tpu.vector_store %arg6[%c0_147, %c2_148, %c0_149, %c0_150, %c0_151], %183 {strides = array<i32>} : memref<1x4x2x8x128xf32, #tpu.memory_space<vmem>>, vector<1x1x2x8x128xf32>,
    %184 = arith.select %151, %146, %143 : vector<2x32x128xi1>, vector<2x32x128xf32>
    %c0_152 = arith.constant 0 : index
    %c3_153 = arith.constant 3 : index
    %c0_154 = arith.constant 0 : index
    %c0_155 = arith.constant 0 : index
    %185 = vector.load %arg2[%c0_152, %c3_153, %c0_154, %c0_155] : memref<2x4x32x128xbf16, #tpu.memory_space<vmem>>, vector<2x1x32x128xbf16>
    %186 = vector.shape_cast %185 : vector<2x1x32x128xbf16> to vector<2x32x128xbf16>
    %187 = arith.extf %186 : vector<2x32x128xbf16> to vector<2x32x128xf32>
    %188 = arith.subf %187, %32 : vector<2x32x128xf32>
    %189 = math.exp %188 : vector<2x32x128xf32>
    %190 = arith.mulf %189, %60 : vector<2x32x128xf32>
    %c3_i32 = arith.constant 3 : i32
    %191 = vector.broadcast %c3_i32 : i32 to vector<2x32x128xi32>
    %192 = arith.cmpi eq, %20, %191 : vector<2x32x128xi32>
    %c0_156 = arith.constant 0 : index
    %c3_157 = arith.constant 3 : index
    %c0_158 = arith.constant 0 : index
    %c0_159 = arith.constant 0 : index
    %c0_160 = arith.constant 0 : index
    %193 = vector.load %arg4[%c0_156, %c3_157, %c0_158, %c0_159, %c0_160] : memref<1x4x2x8x128xf32, #tpu.memory_space<vmem>>, vector<1x1x2x8x128xf32>
    %194 = vector.shape_cast %193 : vector<1x1x2x8x128xf32> to vector<2x8x128xf32>
    %cst_161 = arith.constant 0.000000e+00 : f32
    %195 = vector.broadcast %cst_161 : f32 to vector<2x32x128xf32>
    %196 = arith.select %192, %190, %195 : vector<2x32x128xi1>, vector<2x32x128xf32>
    %197 = vector.shape_cast %196 : vector<2x32x128xf32> to vector<2x4x8x128xf32>
    %cst_162 = arith.constant dense<0.000000e+00> : vector<2x8x128xf32>
    %198 = vector.multi_reduction <add>, %197, %cst_162 [1] : vector<2x4x8x128xf32> to vector<2x8x128xf32>
    %199 = arith.addf %194, %198 : vector<2x8x128xf32>
    %c0_163 = arith.constant 0 : index
    %c3_164 = arith.constant 3 : index
    %c0_165 = arith.constant 0 : index
    %c0_166 = arith.constant 0 : index
    %c0_167 = arith.constant 0 : index
    %200 = vector.load %arg4[%c0_163, %c3_164, %c0_165, %c0_166, %c0_167] : memref<1x4x2x8x128xf32, #tpu.memory_space<vmem>>, vector<1x1x2x8x128xf32>
    %201 = vector.shape_cast %200 : vector<1x1x2x8x128xf32> to vector<2x8x128xf32>
    %202 = vector.shape_cast %199 : vector<2x8x128xf32> to vector<1x1x2x8x128xf32>
    tpu.vector_store %arg4[%c0_163, %c3_164, %c0_165, %c0_166, %c0_167], %202 {strides = array<i32>} : memref<1x4x2x8x128xf32, #tpu.memory_space<vmem>>, vector<1x1x2x8x128xf32>,
    %c0_168 = arith.constant 0 : index
    %c3_169 = arith.constant 3 : index
    %c0_170 = arith.constant 0 : index
    %c0_171 = arith.constant 0 : index
    %c0_172 = arith.constant 0 : index
    %203 = vector.load %arg5[%c0_168, %c3_169, %c0_170, %c0_171, %c0_172] : memref<1x4x2x8x128xf32, #tpu.memory_space<vmem>>, vector<1x1x2x8x128xf32>
    %204 = vector.shape_cast %203 : vector<1x1x2x8x128xf32> to vector<2x8x128xf32>
    %cst_173 = arith.constant 0.000000e+00 : f32
    %205 = vector.shape_cast %15 : vector<1x32x128xi1> to vector<1x32x128xi1>
    %206 = vector.broadcast %205 : vector<1x32x128xi1> to vector<2x32x128xi1>
    %207 = vector.broadcast %cst_173 : f32 to vector<2x32x128xf32>
    %208 = arith.select %206, %190, %207 : vector<2x32x128xi1>, vector<2x32x128xf32>
    %209 = vector.shape_cast %208 : vector<2x32x128xf32> to vector<2x4x8x128xf32>
    %cst_174 = arith.constant dense<0.000000e+00> : vector<2x8x128xf32>
    %210 = vector.multi_reduction <add>, %209, %cst_174 [1] : vector<2x4x8x128xf32> to vector<2x8x128xf32>
    %211 = arith.addf %204, %210 : vector<2x8x128xf32>
    %c0_175 = arith.constant 0 : index
    %c3_176 = arith.constant 3 : index
    %c0_177 = arith.constant 0 : index
    %c0_178 = arith.constant 0 : index
    %c0_179 = arith.constant 0 : index
    %212 = vector.load %arg5[%c0_175, %c3_176, %c0_177, %c0_178, %c0_179] : memref<1x4x2x8x128xf32, #tpu.memory_space<vmem>>, vector<1x1x2x8x128xf32>
    %213 = vector.shape_cast %212 : vector<1x1x2x8x128xf32> to vector<2x8x128xf32>
    %214 = vector.shape_cast %211 : vector<2x8x128xf32> to vector<1x1x2x8x128xf32>
    tpu.vector_store %arg5[%c0_175, %c3_176, %c0_177, %c0_178, %c0_179], %214 {strides = array<i32>} : memref<1x4x2x8x128xf32, #tpu.memory_space<vmem>>, vector<1x1x2x8x128xf32>,
    %c0_180 = arith.constant 0 : index
    %c3_181 = arith.constant 3 : index
    %c0_182 = arith.constant 0 : index
    %c0_183 = arith.constant 0 : index
    %c0_184 = arith.constant 0 : index
    %215 = vector.load %arg6[%c0_180, %c3_181, %c0_182, %c0_183, %c0_184] : memref<1x4x2x8x128xf32, #tpu.memory_space<vmem>>, vector<1x1x2x8x128xf32>
    %216 = vector.shape_cast %215 : vector<1x1x2x8x128xf32> to vector<2x8x128xf32>
    %217 = arith.extui %192 : vector<2x32x128xi1> to vector<2x32x128xi32>
    %218 = arith.sitofp %217 : vector<2x32x128xi32> to vector<2x32x128xf32>
    %219 = vector.shape_cast %218 : vector<2x32x128xf32> to vector<2x4x8x128xf32>
    %cst_185 = arith.constant dense<0.000000e+00> : vector<2x8x128xf32>
    %220 = vector.multi_reduction <add>, %219, %cst_185 [1] : vector<2x4x8x128xf32> to vector<2x8x128xf32>
    %221 = arith.addf %216, %220 : vector<2x8x128xf32>
    %c0_186 = arith.constant 0 : index
    %c3_187 = arith.constant 3 : index
    %c0_188 = arith.constant 0 : index
    %c0_189 = arith.constant 0 : index
    %c0_190 = arith.constant 0 : index
    %222 = vector.load %arg6[%c0_186, %c3_187, %c0_188, %c0_189, %c0_190] : memref<1x4x2x8x128xf32, #tpu.memory_space<vmem>>, vector<1x1x2x8x128xf32>
    %223 = vector.shape_cast %222 : vector<1x1x2x8x128xf32> to vector<2x8x128xf32>
    %224 = vector.shape_cast %221 : vector<2x8x128xf32> to vector<1x1x2x8x128xf32>
    tpu.vector_store %arg6[%c0_186, %c3_187, %c0_188, %c0_189, %c0_190], %224 {strides = array<i32>} : memref<1x4x2x8x128xf32, #tpu.memory_space<vmem>>, vector<1x1x2x8x128xf32>,
    %225 = arith.select %192, %187, %184 : vector<2x32x128xi1>, vector<2x32x128xf32>
    %c0_191 = arith.constant 0 : index
    %c0_192 = arith.constant 0 : index
    %c0_193 = arith.constant 0 : index
    %c0_194 = arith.constant 0 : index
    %226 = vector.load %arg7[%c0_191, %c0_192, %c0_193, %c0_194] : memref<1x2x8x128xf32, #tpu.memory_space<vmem>>, vector<1x2x8x128xf32>
    %227 = vector.shape_cast %226 : vector<1x2x8x128xf32> to vector<2x8x128xf32>
    %228 = math.log %55 : vector<2x32x128xf32>
    %229 = arith.addf %228, %32 : vector<2x32x128xf32>
    %230 = arith.subf %229, %225 : vector<2x32x128xf32>
    %cst_195 = arith.constant 0.000000e+00 : f32
    %231 = vector.shape_cast %15 : vector<1x32x128xi1> to vector<1x32x128xi1>
    %232 = vector.broadcast %231 : vector<1x32x128xi1> to vector<2x32x128xi1>
    %233 = vector.broadcast %cst_195 : f32 to vector<2x32x128xf32>
    %234 = arith.select %232, %230, %233 : vector<2x32x128xi1>, vector<2x32x128xf32>
    %235 = vector.shape_cast %234 : vector<2x32x128xf32> to vector<2x4x8x128xf32>
    %cst_196 = arith.constant dense<0.000000e+00> : vector<2x8x128xf32>
    %236 = vector.multi_reduction <add>, %235, %cst_196 [1] : vector<2x4x8x128xf32> to vector<2x8x128xf32>
    %237 = arith.addf %227, %236 : vector<2x8x128xf32>
    %c0_197 = arith.constant 0 : index
    %c0_198 = arith.constant 0 : index
    %c0_199 = arith.constant 0 : index
    %c0_200 = arith.constant 0 : index
    %238 = vector.load %arg7[%c0_197, %c0_198, %c0_199, %c0_200] : memref<1x2x8x128xf32, #tpu.memory_space<vmem>>, vector<1x2x8x128xf32>
    %239 = vector.shape_cast %238 : vector<1x2x8x128xf32> to vector<2x8x128xf32>
    %240 = vector.shape_cast %237 : vector<2x8x128xf32> to vector<1x2x8x128xf32>
    tpu.vector_store %arg7[%c0_197, %c0_198, %c0_199, %c0_200], %240 {strides = array<i32>} : memref<1x2x8x128xf32, #tpu.memory_space<vmem>>, vector<1x2x8x128xf32>,
    return
  }
  func.func @transform_0(%arg0: i32, %arg1: i32) -> (i32, i32, i32, i32) {
    %c2_i32 = arith.constant 2 : i32
    %0 = arith.muli %arg0, %c2_i32 : i32
    %1 = arith.addi %0, %arg1 : i32
    %c2_i32_0 = arith.constant 2 : i32
    %2 = arith.minsi %1, %c2_i32_0 : i32
    %c0_i32 = arith.constant 0 : i32
    %c0_i32_1 = arith.constant 0 : i32
    %c0_i32_2 = arith.constant 0 : i32
    %c0_i32_3 = arith.constant 0 : i32
    return %c0_i32, %c0_i32_1, %2, %c0_i32_2 : i32, i32, i32, i32
  }
  func.func @transform_1(%arg0: i32, %arg1: i32) -> (i32, i32, i32) {
    %c2_i32 = arith.constant 2 : i32
    %0 = arith.muli %arg0, %c2_i32 : i32
    %1 = arith.addi %0, %arg1 : i32
    %c2_i32_0 = arith.constant 2 : i32
    %2 = arith.minsi %1, %c2_i32_0 : i32
    %c0_i32 = arith.constant 0 : i32
    %c0_i32_1 = arith.constant 0 : i32
    %c0_i32_2 = arith.constant 0 : i32
    return %c0_i32, %2, %c0_i32_1 : i32, i32, i32
  }
  func.func @transform_2(%arg0: i32, %arg1: i32) -> (i32, i32, i32, i32, i32) {
    %c0_i32 = arith.constant 0 : i32
    %c0_i32_0 = arith.constant 0 : i32
    %c0_i32_1 = arith.constant 0 : i32
    %c0_i32_2 = arith.constant 0 : i32
    %c0_i32_3 = arith.constant 0 : i32
    return %arg0, %c0_i32, %c0_i32_0, %c0_i32_1, %c0_i32_2 : i32, i32, i32, i32, i32
  }
  func.func @transform_3(%arg0: i32, %arg1: i32) -> (i32, i32, i32, i32, i32) {
    %c0_i32 = arith.constant 0 : i32
    %c0_i32_0 = arith.constant 0 : i32
    %c0_i32_1 = arith.constant 0 : i32
    %c0_i32_2 = arith.constant 0 : i32
    %c0_i32_3 = arith.constant 0 : i32
    return %arg0, %c0_i32, %c0_i32_0, %c0_i32_1, %c0_i32_2 : i32, i32, i32, i32, i32
  }
  func.func @transform_4(%arg0: i32, %arg1: i32) -> (i32, i32, i32, i32, i32) {
    %c0_i32 = arith.constant 0 : i32
    %c0_i32_0 = arith.constant 0 : i32
    %c0_i32_1 = arith.constant 0 : i32
    %c0_i32_2 = arith.constant 0 : i32
    %c0_i32_3 = arith.constant 0 : i32
    return %arg0, %c0_i32, %c0_i32_0, %c0_i32_1, %c0_i32_2 : i32, i32, i32, i32, i32
  }
  func.func @transform_5(%arg0: i32, %arg1: i32) -> (i32, i32, i32, i32) {
    %c0_i32 = arith.constant 0 : i32
    %c0_i32_0 = arith.constant 0 : i32
    %c0_i32_1 = arith.constant 0 : i32
    %c0_i32_2 = arith.constant 0 : i32
    return %arg0, %c0_i32, %c0_i32_0, %c0_i32_1 : i32, i32, i32, i32
  }
}

</mosaic_0001>

<bundles_post_ra>
// kernel: tpu_custom_call.1
= control target key start
LH: loop header
LB: loop body
LE: loop exit
PB: predicated region body
PF: predicated region fallthrough
CT: control target
= control target key end

     0   :  { %s3875_s0 = inlined_call_operand.hbm [shape: bf16[2,4,72,128], index: 0, kind: input, shape index: {}]   ;;  %s3876_s1 = inlined_call_operand.hbm [shape: s32[2,72,128], index: 1, kind: input, shape index: {}]   ;;  %s3877_s2 = inlined_call_operand.hbm [shape: f32[2,4,2,8,128], index: 2, kind: output, shape index: {0}]   ;;  %s3878_s3 = inlined_call_operand.hbm [shape: f32[2,4,2,8,128], index: 3, kind: output, shape index: {1}]   ;;  %s3879_s4 = inlined_call_operand.hbm [shape: f32[2,4,2,8,128], index: 4, kind: output, shape index: {2}]   ;;  %s3880_s5 = inlined_call_operand.hbm [shape: f32[2,2,8,128], index: 5, kind: output, shape index: {3}]  }
   0x1   :  { %3965 = sst [smem:[#allocation59_spill]] %s3877_s2 }
   0x2   :  { %3966 = sst [smem:[#allocation60_spill]] %s3879_s4 }
   0x3   :  { %3967 = sst [smem:[#allocation61_spill]] %s3880_s5 }
   0x4   :  { %11 = vsyncpa [#allocation3], 0 }
   0x5   :  { %13 = vsyncpa [#allocation3 + $0x1], 0 }
   0x6   :  { %14 = vsyncpa [#allocation6], 0 }
   0x7   :  { %16 = vsyncpa [#allocation6 + $0x1], 0 }
   0x8   :  { %17 = vsyncpa [#allocation4], 0 }
   0x9   :  { %19 = vsyncpa [#allocation4 + $0x1], 0 }
   0xa   :  { %20 = vsyncpa [#allocation9], 0 }
   0xb   :  { %22 = vsyncpa [#allocation9 + $0x1], 0 }
   0xc   :  { %23 = vsyncpa [#allocation12], 0 }
   0xd   :  { %25 = vsyncpa [#allocation12 + $0x1], 0  ;;  %s2365_s18 = smov 0   ;;  %s2367_s19 = smov 0  }
   0xe   :  { %s2369_s20 = smov 0   ;;  %s2371_s21 = smov 0  }
   0xf   :  { %s2373_s22 = smov 0   ;;  %s2375_s23 = smov 0  }
  0x10   :  { %s2377_s24 = smov 0   ;;  %s2379_s25 = smov 0  }
  0x11   :  { %s2381_s26 = smov 0   ;;  %s2383_s27 = smov 0  }
  0x12   :  { %s2385_s28 = smov 0  }
  0x13 LB: > { %3968 = sst [smem:[#allocation22_spill]] %s2275_s18  ;;  %s2421_s29 = sadd.s32 4294967295, %s2315_s28   ;;  %s2315_s28 = sphi %s2385_s28, %s31_s28   ;;  %s2311_s27 = sphi %s2383_s27, %s4096_s27   ;;  %s2307_s26 = sphi %s2381_s26, %s4095_s26   ;;  %s2303_s25 = sphi %s2379_s25, %s4094_s25   ;;  %s2299_s24 = sphi %s2377_s24, %s4102_s24   ;;  %s2295_s23 = sphi %s2375_s23, %s4101_s23   ;;  %s2291_s22 = sphi %s2373_s22, %s4100_s22   ;;  %s2287_s21 = sphi %s2371_s21, %s4099_s21   ;;  %s2283_s20 = sphi %s2369_s20, %s4091_s20   ;;  %s2279_s19 = sphi %s2367_s19, %s4098_s19   ;;  %s2275_s18 = sphi %s2365_s18, %s4097_s18  }
  0x14   : > { %3969 = sst [smem:[#allocation23_spill]] %s2283_s20  ;;  %s3882_s30 = sadd.s32 4294967294, %s2315_s28  }
  0x15   : > { %3970 = sst [smem:[#allocation24_spill]] %s2307_s26  ;;  %s40_s6 = sadd.s32 1, %s2307_s26 }
  0x16   : > { %3971 = sst [smem:[#allocation25_spill]] %s2311_s27  ;;  %s43_s7 = sadd.s32 1, %s2311_s27 }
  0x17   : > { %p41_p0 = scmp.ge.s32.totalorder %s40_s6, 2  ;;  %s1589_s8 = sshll.u32 %s2311_s27, 1 }
  0x18   : > { %s48_s9 = sadd.s32 %s2307_s26, %s1589_s8  ;;  %s58_s10 = sadd.s32 1, %s2295_s23 }
  0x19   : > { %s4104_s6 = smov (%p41_p0, %s40_s6), 0  ;;  %s4106_s7 = smov (!%p41_p0, %s43_s7), %s2311_s27 }
  0x1a   : > { %3972 = sst [smem:[#allocation26_spill]] %s4104_s6  ;;  %p49_p1 = scmp.lt.s32.totalorder %s48_s9, 2 }
  0x1b   : > { %p65_p2 = scmp.ne.s32.totalorder %s2295_s23, %s2291_s22  ;;  %p45_p3 = scmp.ge.s32.totalorder %s4106_s7, 2 }
  0x1c   : > { %p66_p4 = scmp.eq.s32.totalorder %s2315_s28, 0  ;;  %s4108_s9 = smov (!%p49_p1, %s48_s9), 2 }
  0x1d   : > { %s4110_s7 = smov (%p45_p3, %s4106_s7), 0  ;;  %p71_p6 = scmp.ne.s32.totalorder %s2291_s22, %s2287_s21 }
  0x1e   : > { %3973 = sst [smem:[#allocation27_spill]] %s4110_s7  ;;  %p2439_p5 = por %p66_p4, %p65_p2 }
  0x1f   : > { %s1590_s12 = sshll.u32 %s4110_s7, 1  ;;  %p72_p7 = scmp.eq.s32.totalorder %s2421_s29, 0 }
  0x20   : > { %s52_s13 = sadd.s32 %s1590_s12, %s4104_s6  ;;  %s115_s14 = ssub.s32 %s2311_s27, %s4110_s7 }
  0x21   : > { %p53_p8 = scmp.lt.s32.totalorder %s52_s13, 2  ;;  %p2450_p9 = por %p72_p7, %p71_p6 }
  0x22   : > { %p116_p10 = scmp.eq.s32.totalorder %s115_s14, 0  ;;  %s118_s16 = sadd.s32 1, %s2283_s20 }
  0x23   : > { %s4112_s13 = smov (!%p53_p8, %s52_s13), 2  ;;  %p128_p11 = scmp.ne.s32.totalorder %s2283_s20, %s2279_s19 }
  0x24   : > { %s2456_s17 = scalar_select %p116_p10, %s2283_s20, %s118_s16  }
  0x25   : > { %s55_s8 = ssub.s32 %s4108_s9, %s4112_s13  ;;  %p129_p13 = scmp.eq.s32.totalorder %s2421_s29, 3 }
  0x26   : > { %3976 = sst [smem:[#allocation28_spill]] %s2456_s17  ;;  %p56_p12 = scmp.eq.s32.totalorder %s55_s8, 0 }
  0x27   : > { %p134_p0 = scmp.ne.s32.totalorder %s2279_s19, %s2275_s18  ;;  %p135_p1 = scmp.eq.s32.totalorder %s3882_s30, 3 }
  0x28   : > { %s2467_s21 = scalar_select %p56_p12, %s2295_s23, %s58_s10  }
  0x29   : > { %p2469_p2 = por %p129_p13, %p128_p11  ;;  %p2473_p3 = por %p135_p1, %p134_p0 }
  0x2a   : > { %3977 = sst [smem:[#allocation29_spill]] %s2467_s21  ;;  %p1594_p4 = scmp.ge.s32.totalorder %s2315_s28, 4 }
  0x2b   : > { %s3979_s7 = scalar_select %p2473_p3, 1, 0 }
  0x2c   : > { %229 = sbr.rel (%p1594_p4) target bundleno = 99 (0x63), region = 16 }
  0x2d   : > { %3980 = sst [smem:[#allocation30_spill]] %s3979_s7 }
  0x33   : > { %232 = sbr.rel (!%p2439_p5) target bundleno = 75 (0x4b), region = 20 }
  0x3a   : > { %s233_s13 = sand.u32 1, %s2295_s23   ;;  %s1597_s14 = sshll.u32 %s4108_s9, 2 }
  0x3b   : > { %s1595_s10 = sshll.u32 %s233_s13, 7  ;;  %s243_s16 = ssub.s32 9, %s1597_s14 }
  0x3c   : > { %p244_p6 = scmp.lt.s32.totalorder %s243_s16, 4  ;;  %s234_s6 = scalar_lea.sflag [#allocation3], %s233_s13 }
  0x3d   : > { %s237_s27 = scalar_lea.vmem [#allocation2], %s1595_s10 }
  0x3e   : > { %s4114_s16 = smov (!%p244_p6, %s243_s16), 4 }
  0x3f   : > { %s1598_s8 = sshll.u32 %s4114_s16, 9 }
  0x40   : > { %s248_s30 = ssub.s32 2048, %s1598_s8 }
  0x41   : > { %249 = vsyncadd %s234_s6, %s248_s30  ;;  %p1599_p7 = scmp.ne.s32.totalorder %s1598_s8, 0  ;;  %s1757_s26 = sshll.u32 %s4108_s9, 8 }
  0x42   : > { %s252_s20 = scalar_lea.hbm %s3875_s0, %s1757_s26  ;;  %s259_s7 = sld [smem:[#allocation0]]  }
  0x43   : > { %s267_s18 = sshll.u32 %s237_s27, 4  ;;  %s2317_s5 = smov 576   ;;  %s268_s18 = int_to_ptr.vmem [resolvable:$true] %s267_s18 }
  0x44   : > { %274 = sst [smem:[#allocation14]] %s2317_s5  ;;  %s2318_s14 = smov 256  }
  0x45   : > { %278 = sst [smem:[#allocation14 + $0x2]] %s4114_s16  ;;  %s2319_s4 = smov 64  }
  0x46   : > { %276 = sst [smem:[#allocation14 + $0x1]] %s2318_s14  ;;  %s2320_s10 = smov 4  }
  0x47   : > { %280 = sst [smem:[#allocation14 + $0x3]] %s2319_s4  ;;  %s2321_s2 = smov [#allocation13]  }
  0x48   : > { %s1603_s13 = sshll.u32 %s259_s7, 26  ;;  %282 = sst [smem:[#allocation14 + $0x4]] %s2319_s4 }
  0x49   : > { %s1604_s30 = sadd.s32 134217728, %s1603_s13  ;;  %284 = sst [smem:[#allocation14 + $0x5]] %s2320_s10 }
  0x4a   : > { %286 = dma.general (%p1599_p7), %s252_s20, %s1598_s8, %s268_s18, %s234_s6, %s2321_s2, [#allocation14], %s1604_s30, 0  }
  0x4b PF: > { %289 = sbr.rel (!%p2439_p5) target bundleno = 99 (0x63), region = 24 }
  0x52   : > { %s290_s5 = sand.u32 1, %s2295_s23   ;;  %s1608_s26 = sshll.u32 %s4108_s9, 2 }
  0x53   : > { %s1606_s27 = sshll.u32 %s290_s5, 6  ;;  %s300_s17 = ssub.s32 9, %s1608_s26 }
  0x54   : > { %p301_p8 = scmp.lt.s32.totalorder %s300_s17, 4  ;;  %s291_s21 = scalar_lea.sflag [#allocation6], %s290_s5 }
  0x55   : > { %s294_s16 = scalar_lea.vmem [#allocation5], %s1606_s27 }
  0x56   : > { %s4116_s17 = smov (!%p301_p8, %s300_s17), 4 }
  0x57   : > { %s1609_s7 = sshll.u32 %s4116_s17, 8 }
  0x58   : > { %s305_s4 = ssub.s32 1024, %s1609_s7 }
  0x59   : > { %306 = vsyncadd %s291_s21, %s305_s4  ;;  %p1610_p10 = scmp.ne.s32.totalorder %s1609_s7, 0  ;;  %s1760_s2 = sshll.u32 %s4108_s9, 9 }
  0x5a   : > { %s309_s6 = scalar_lea.hbm %s3876_s1, %s1760_s2  ;;  %s316_s11 = sld [smem:[#allocation0]]  }
  0x5b   : > { %s324_s8 = sshll.u32 %s294_s16, 4  ;;  %s2322_s14 = smov 1152   ;;  %s325_s8 = int_to_ptr.vmem [resolvable:$true] %s324_s8 }
  0x5c   : > { %331 = sst [smem:[#allocation16]] %s2322_s14  ;;  %s2323_s13 = smov 512  }
  0x5d   : > { %335 = sst [smem:[#allocation16 + $0x2]] %s4116_s17  ;;  %s2324_s30 = smov 128  }
  0x5e   : > { %333 = sst [smem:[#allocation16 + $0x1]] %s2323_s13  ;;  %s2325_s26 = smov 8  }
  0x5f   : > { %337 = sst [smem:[#allocation16 + $0x3]] %s2324_s30  ;;  %s2326_s9 = smov [#allocation15]  }
  0x60   : > { %s1614_s10 = sshll.u32 %s316_s11, 26  ;;  %339 = sst [smem:[#allocation16 + $0x4]] %s2324_s30 }
  0x61   : > { %s1615_s5 = sadd.s32 134217728, %s1614_s10  ;;  %341 = sst [smem:[#allocation16 + $0x5]] %s2325_s26 }
  0x62   : > { %343 = dma.general (%p1610_p10), %s309_s6, %s1609_s7, %s325_s8, %s291_s21, %s2326_s9, [#allocation16], %s1615_s5, 0  }
  0x63 PF: > { %p1617_p5 = scmp.ge.s32.totalorder %s2315_s28, 1  ;;  %p345_p11 = scmp.lt.s32.totalorder %s2315_s28, 5 }
  0x65   : > { %p346_p12 = pnand %p1617_p5, %p345_p11 }
  0x67   : > { %349 = sbr.rel (%p346_p12) target bundleno = 393 (0x189), region = 28 }
  0x6e   : > { %s351_s27 = sand.u32 1, %s2291_s22  }
  0x6f   : > { %s1618_s17 = sshll.u32 %s351_s27, 7  ;;  %s352_s4 = scalar_lea.sflag [#allocation3], %s351_s27 }
  0x70   : > { %s2499_s16 = scalar_lea.vmem [#allocation2], %s1618_s17 }
  0x71   : > { %2254 = dma.done.wait (%p2450_p9), %s352_s4, 2048  }
  0x72   : > { %2256 = vsyncadd (%p2450_p9), %s352_s4, 4294965248  ;;  %s1619_s7 = sshll.u32 %s351_s27, 6  ;;  %s361_s21 = scalar_lea.sflag [#allocation6], %s351_s27 }
  0x73   : > { %s2505_s2 = scalar_lea.vmem [#allocation5], %s1619_s7 }
  0x74   : > { %2258 = dma.done.wait (%p2450_p9), %s361_s21, 1024  }
  0x75   : > { %2260 = vsyncadd (%p2450_p9), %s361_s21, 4294966272  ;;  %s2512_s18 = sand.u32 1, %s2279_s19   ;;  %p1624_p13 = scmp.ne.s32.totalorder %s2299_s24, 0 }
  0x76   : > { %s1620_s20 = sshll.u32 %s2512_s18, 6  ;;  %s1623_s6 = sshll.u32 %s2512_s18, 4  ;;  %v2327_v0 = vmov (!%p1624_p13), 0.0  }
  0x77   : > { %s2516_s11 = scalar_lea.vmem [#allocation7], %s1620_s20  ;;  %s2518_s8 = scalar_lea.vmem [#allocation8], %s1620_s20 }
  0x78   : > { %s2520_s14 = scalar_lea.vmem [#allocation10], %s1620_s20  ;;  %s2522_s13 = scalar_lea.vmem [#allocation11], %s1623_s6  ;;  %433 = vst [vmem:[%s2516_s11] sm:$0xff] (!%p1624_p13), %v2327_v0  ;;  %434 = vst [vmem:[%s2516_s11 + $0x8] sm:$0xff] (!%p1624_p13), %v2327_v0 }
  0x79   : > { %432 = sbr.rel (%p1624_p13) target bundleno = 133 (0x85), region = 40  ;;  %435 = vst [vmem:[%s2516_s11 + $0x10] sm:$0xff] (!%p1624_p13), %v2327_v0  ;;  %436 = vst [vmem:[%s2516_s11 + $0x18] sm:$0xff] (!%p1624_p13), %v2327_v0 }
  0x7a   : > { %437 = vst [vmem:[%s2516_s11 + $0x20] sm:$0xff] (!%p1624_p13), %v2327_v0  ;;  %438 = vst [vmem:[%s2516_s11 + $0x28] sm:$0xff] (!%p1624_p13), %v2327_v0 }
  0x7b   : > { %439 = vst [vmem:[%s2516_s11 + $0x30] sm:$0xff] (!%p1624_p13), %v2327_v0  ;;  %440 = vst [vmem:[%s2516_s11 + $0x38] sm:$0xff] (!%p1624_p13), %v2327_v0 }
  0x7c   : > { %441 = vst [vmem:[%s2518_s8] sm:$0xff] (!%p1624_p13), %v2327_v0  ;;  %442 = vst [vmem:[%s2518_s8 + $0x8] sm:$0xff] (!%p1624_p13), %v2327_v0 }
  0x7d   : > { %443 = vst [vmem:[%s2518_s8 + $0x10] sm:$0xff] (!%p1624_p13), %v2327_v0  ;;  %444 = vst [vmem:[%s2518_s8 + $0x18] sm:$0xff] (!%p1624_p13), %v2327_v0 }
  0x7e   : > { %445 = vst [vmem:[%s2518_s8 + $0x20] sm:$0xff] (!%p1624_p13), %v2327_v0  ;;  %446 = vst [vmem:[%s2518_s8 + $0x28] sm:$0xff] (!%p1624_p13), %v2327_v0 }
  0x7f   : > { %447 = vst [vmem:[%s2518_s8 + $0x30] sm:$0xff] (!%p1624_p13), %v2327_v0  ;;  %448 = vst [vmem:[%s2518_s8 + $0x38] sm:$0xff] (!%p1624_p13), %v2327_v0 }
  0x80   : > { %449 = vst [vmem:[%s2520_s14] sm:$0xff] %v2327_v0  ;;  %450 = vst [vmem:[%s2520_s14 + $0x8] sm:$0xff] %v2327_v0 }
  0x81   : > { %451 = vst [vmem:[%s2520_s14 + $0x10] sm:$0xff] %v2327_v0  ;;  %452 = vst [vmem:[%s2520_s14 + $0x18] sm:$0xff] %v2327_v0 }
  0x82   : > { %453 = vst [vmem:[%s2520_s14 + $0x20] sm:$0xff] %v2327_v0  ;;  %454 = vst [vmem:[%s2520_s14 + $0x28] sm:$0xff] %v2327_v0 }
  0x83   : > { %455 = vst [vmem:[%s2520_s14 + $0x30] sm:$0xff] %v2327_v0  ;;  %456 = vst [vmem:[%s2520_s14 + $0x38] sm:$0xff] %v2327_v0 }
  0x84   : > { %457 = vst [vmem:[%s2522_s13] sm:$0xff] %v2327_v0  ;;  %458 = vst [vmem:[%s2522_s13 + $0x8] sm:$0xff] %v2327_v0 }
  0x85 PF: > { %s1625_s15 = sshll.u32 %s2303_s25, 1  ;;  %v462_v1 = vlaneseq  ;;  %v2553_v2 = vld [vmem:[%s2499_s16] sm:$0xf]  ;;  %v2556_v3 = vld [vmem:[%s2499_s16 + $0x4] sm:$0xf]  ;;  %s3295_s5 = sshll.u32 %s2303_s25, 10 }
  0x86   : > { %3981 = vst [vmem:[#allocation31_spill] sm:$0xff] %v2553_v2  ;;  %3982 = vst [vmem:[#allocation32_spill] sm:$0xff] %v2556_v3  ;;  %s460_s30 = sadd.s32 %s2299_s24, %s1625_s15  ;;  %v2560_v4 = vld [vmem:[%s2499_s16 + $0x8] sm:$0xf]  ;;  %v2563_v5 = vld [vmem:[%s2499_s16 + $0xc] sm:$0xf]  ;;  %v3894_v16 = vunpack.c.l.bf16 %v2553_v2  ;;  %v3893_v17 = vunpack.c.l.bf16 %v2556_v3  ;;  %s3316_s17 = scalar_lea.hbm %s3878_s3, %s3295_s5 }
  0x87   : > { %v1627_v6 = vld [vmem:[%s2499_s16 + $0x10] sm:$0xf]  ;;  %s1626_s10 = sshll.u32 %s460_s30, 5  ;;  %v463_v7 = vshrl.u32 %v462_v1, 7  ;;  %v468_v8 = vand.u32 127, %v462_v1  ;;  %v3905_v43 = vunpack.c.l.bf16 %v2560_v4  ;;  %v3902_v44 = vunpack.c.l.bf16 %v2563_v5  ;;  %s1315_s24 = sand.u32 1, %s2421_s29  }
  0x88   : > { %v1628_v9 = vld [vmem:[%s2499_s16 + $0x14] sm:$0xf]  ;;  %v527_v10 = vmax.bf16 %v1627_v6, %v2553_v2  ;;  %v469_v11 = vstv %s1626_s10  ;;  %v1629_v12 = vld [vmem:[%s2499_s16 + $0x18] sm:$0xf]  ;;  %v1630_v13 = vld [vmem:[%s2499_s16 + $0x1c] sm:$0xf]  ;;  %v609_v50 = vunpack.c.l.bf16 %v1627_v6 }
  0x89   : > { %v528_v14 = vmax.bf16 %v1628_v9, %v2556_v3  ;;  %v2572_v15 = vld [vmem:[%s2499_s16 + $0x20] sm:$0xf]  ;;  %v464_v18 = vadd.s32 8, %v463_v7  ;;  %v465_v19 = vadd.s32 16, %v463_v7  ;;  %v466_v20 = vadd.s32 24, %v463_v7  ;;  %v1671_v2 = vld [vmem:[%s2518_s8 + $0x10] sm:$0xff] }
  0x8a   : > { %v470_v21 = vadd.s32 %v469_v11, %v463_v7  ;;  %v2577_v22 = vld [vmem:[%s2499_s16 + $0x24] sm:$0xf]  ;;  %v529_v23 = vmax.bf16 %v1629_v12, %v2560_v4  ;;  %v530_v24 = vmax.bf16 %v1630_v13, %v2563_v5  ;;  %v2582_v25 = vld [vmem:[%s2499_s16 + $0x28] sm:$0xf]  ;;  %v2585_v26 = vld [vmem:[%s2499_s16 + $0x2c] sm:$0xf]  ;;  %v544_v27 = vmax.bf16 %v2572_v15, %v527_v10 }
  0x8b   : > { %v545_v28 = vmax.bf16 %v2577_v22, %v528_v14  ;;  %v2590_v29 = vld [vmem:[%s2499_s16 + $0x30] sm:$0xf]  ;;  %v471_v30 = vadd.s32 %v469_v11, %v464_v18  ;;  %v472_v31 = vadd.s32 %v469_v11, %v465_v19  ;;  %v473_v32 = vadd.s32 %v469_v11, %v466_v20  ;;  %v2593_v34 = vld [vmem:[%s2499_s16 + $0x34] sm:$0xf]  ;;  %v2596_v35 = vld [vmem:[%s2499_s16 + $0x38] sm:$0xf] }
  0x8c   : > { %v474_v33 = vmul.u32 128, %v470_v21  ;;  %v546_v36 = vmax.bf16 %v2582_v25, %v529_v23  ;;  %v547_v37 = vmax.bf16 %v2585_v26, %v530_v24  ;;  %v2601_v38 = vld [vmem:[%s2499_s16 + $0x3c] sm:$0xf]  ;;  %v561_v39 = vmax.bf16 %v2590_v29, %v544_v27  ;;  %s1355_s26 = sshll.u32 %s2518_s8, 4  ;;  %s3344_s4 = scalar_lea.sflag [#allocation9], %s1315_s24  ;;  %s3318_s26 = int_to_ptr.vmem [resolvable:$true] %s1355_s26 }
  0x8d   : > { %v562_v40 = vmax.bf16 %v2593_v34, %v545_v28  ;;  %v475_v41 = vmul.u32 128, %v471_v30  ;;  %v476_v42 = vmul.u32 128, %v472_v31  ;;  %v610_v51 = vunpack.c.l.bf16 %v1628_v9  ;;  %v2658_v31 = vld [vmem:[%s2499_s16 + $0x50] sm:$0xf]  ;;  %s2329_s7 = smov [#allocation8]  }
  0x8e   : > { %v477_v45 = vmul.u32 128, %v473_v32  ;;  %v563_v46 = vmax.bf16 %v2596_v35, %v546_v36  ;;  %v564_v47 = vmax.bf16 %v2601_v38, %v547_v37  ;;  %v2609_v48 = vunpack.c.l.bf16 %v561_v39  ;;  %v2662_v36 = vld [vmem:[%s2499_s16 + $0x48] sm:$0xf]  ;;  %v2665_v37 = vld [vmem:[%s2499_s16 + $0x54] sm:$0xf]  ;;  %s2101_s21 = sshll.u32 %s2329_s7, 4  ;;  %s2102_s21 = int_to_ptr.vmem [resolvable:$false] %s2101_s21 }
  0x8f   : > { %v2611_v49 = vunpack.c.l.bf16 %v562_v40  ;;  %v2613_v52 = vadd.s32 %v474_v33, %v468_v8  ;;  %v2622_v56 = vadd.s32 %v475_v41, %v468_v8  ;;  %v2624_v57 = vadd.s32 %v476_v42, %v468_v8  ;;  %v2669_v41 = vld [vmem:[%s2499_s16 + $0x4c] sm:$0xf]  ;;  %p2104_p4 = scmp.lt.s32.totalorder %s3318_s26, %s2102_s21 }
  0x90   : > { %3983 = vst [vmem:[#allocation33_spill] sm:$0xff] %v2609_v48  ;;  %v2615_v53 = vunpack.c.l.bf16 %v563_v46  ;;  %v2617_v54 = vunpack.c.l.bf16 %v564_v47  ;;  %v585_v55 = vsub.f32 %v3894_v16, %v2609_v48  ;;  %v611_v59 = vunpack.c.l.bf16 %v1629_v12  ;;  %v2675_v46 = vld [vmem:[%s2499_s16 + $0x58] sm:$0xf]  ;;  %v2678_v47 = vld [vmem:[%s2499_s16 + $0x5c] sm:$0xf] }
  0x91   : > { %3984 = vst [vmem:[#allocation34_spill] sm:$0xff] %v2611_v49  ;;  %v586_v58 = vsub.f32 %v3893_v17, %v2611_v49  ;;  %v2629_v60 = vadd.s32 %v477_v45, %v468_v8  ;;  %v612_v1 = vunpack.c.l.bf16 %v1630_v13  ;;  %v617_v6 = vsub.f32 %v609_v50, %v2609_v48  ;;  %v2681_v50 = vld [vmem:[%s2499_s16 + $0x60] sm:$0xf] }
  0x92   : > { %3985 = vst [vmem:[#allocation35_spill] sm:$0xff] %v2615_v53  ;;  %3986 = vst [vmem:[#allocation36_spill] sm:$0xff] %v2617_v54  ;;  %v587_v61 = vsub.f32 %v3905_v43, %v2615_v53  ;;  %v588_v62 = vsub.f32 %v3902_v44, %v2617_v54  ;;  %v593_v63 = vmul.f32 1.442695, %v585_v55  ;;  %v618_v7 = vsub.f32 %v610_v51, %v2611_v49  ;;  %v2903_v43 = vld [vmem:[%s2499_s16 + $0x28] sm:$0xff]  }
  0x93   : > { %v595_v0 = vmul.f32 1.442695, %v586_v58  ;;  %v619_v8 = vsub.f32 %v611_v59, %v2615_v53  ;;  %v620_v11 = vsub.f32 %v612_v1, %v2617_v54  ;;  %v625_v12 = vmul.f32 1.442695, %v617_v6  ;;  %v2689_v58 = vld [vmem:[%s2499_s16 + $0x64] sm:$0xf] }
  0x94   : > { %1953 = vpow2.f32 %v593_v63  ;;  %v597_v9 = vmul.f32 1.442695, %v587_v61  ;;  %v599_v10 = vmul.f32 1.442695, %v588_v62  ;;  %v627_v14 = vmul.f32 1.442695, %v618_v7 }
  0x95   : > { %1955 = vpow2.f32 %v595_v0  ;;  %v629_v18 = vmul.f32 1.442695, %v619_v8  ;;  %v649_v13 = vunpack.c.l.bf16 %v2572_v15  ;;  %v650_v19 = vunpack.c.l.bf16 %v2577_v22  ;;  %v2692_v59 = vld [vmem:[%s2499_s16 + $0x68] sm:$0xf]  ;;  %v2695_v61 = vld [vmem:[%s2499_s16 + $0x6c] sm:$0xf] }
  0x96   : > { %1957 = vpow2.f32 %v597_v9  ;;  %v631_v20 = vmul.f32 1.442695, %v620_v11  ;;  %v651_v21 = vunpack.c.l.bf16 %v2582_v25  ;;  %v652_v23 = vunpack.c.l.bf16 %v2585_v26  ;;  %v2652_v25 = vld [vmem:[%s2499_s16 + $0x40] sm:$0xf]  ;;  %v2655_v26 = vld [vmem:[%s2499_s16 + $0x44] sm:$0xf] }
  0x97   : > { %1959 = vpow2.f32 %v599_v10  ;;  %v657_v24 = vsub.f32 %v649_v13, %v2609_v48  ;;  %v658_v27 = vsub.f32 %v650_v19, %v2611_v49  ;;  %v689_v28 = vunpack.c.l.bf16 %v2590_v29  ;;  %3987 = vst [vmem:[#allocation37_spill] sm:$0xff] %v2652_v25  ;;  %v2706_v8 = vld [vmem:[%s2499_s16 + $0x70] sm:$0xf]  ;;  %v2709_v11 = vld [vmem:[%s2499_s16 + $0x74] sm:$0xf]  ;;  %3999 = vst [vmem:[#allocation49_spill] sm:$0xff] %v2903_v43 }
  0x98   : > { %1961 = vpow2.f32 %v625_v12  ;;  %v659_v15 = vsub.f32 %v651_v21, %v2615_v53  ;;  %v660_v22 = vsub.f32 %v652_v23, %v2617_v54  ;;  %v690_v30 = vunpack.c.l.bf16 %v2593_v34  ;;  %v2716_v13 = vld [vmem:[%s2499_s16 + $0x78] sm:$0xf]  ;;  %v2719_v19 = vld [vmem:[%s2499_s16 + $0x7c] sm:$0xf] }
  0x99   : > { %1963 = vpow2.f32 %v627_v14  ;;  %v665_v32 = vmul.f32 1.442695, %v657_v24  ;;  %v667_v29 = vmul.f32 1.442695, %v658_v27  ;;  %v691_v33 = vunpack.c.l.bf16 %v2596_v35 }
  0x9a   : > { %1965 = vpow2.f32 %v629_v18  ;;  %v669_v34 = vmul.f32 1.442695, %v659_v15  ;;  %v671_v39 = vmul.f32 1.442695, %v660_v22  ;;  %v692_v40 = vunpack.c.l.bf16 %v2601_v38 }
  0x9b   : > { %1967 = vpow2.f32 %v631_v20  ;;  %v697_v42 = vsub.f32 %v689_v28, %v2609_v48  ;;  %v698_v45 = vsub.f32 %v690_v30, %v2611_v49  ;;  %v699_v35 = vsub.f32 %v691_v33, %v2615_v53 }
  0x9c   : > { %1969 = vpow2.f32 %v665_v32  ;;  %v700_v51 = vsub.f32 %v692_v40, %v2617_v54  ;;  %v531_v38 = vmax.bf16 %v2658_v31, %v2652_v25  ;;  %v532_v55 = vmax.bf16 %v2665_v37, %v2655_v26 }
  0x9d   : > { %1971 = vpow2.f32 %v667_v29  ;;  %v705_v63 = vmul.f32 1.442695, %v697_v42  ;;  %v707_v0 = vmul.f32 1.442695, %v698_v45  ;;  %v709_v1 = vmul.f32 1.442695, %v699_v35 }
  0x9e   : > { %v2697_v62 = vpop.eup %1953  ;;  %1973 = vpow2.f32 %v669_v34  ;;  %v711_v7 = vmul.f32 1.442695, %v700_v51  ;;  %v533_v9 = vmax.bf16 %v2675_v46, %v2662_v36  ;;  %v534_v10 = vmax.bf16 %v2678_v47, %v2669_v41 }
  0x9f   : > { %v2699_v6 = vpop.eup %1955  ;;  %1975 = vpow2.f32 %v671_v39  ;;  %v548_v14 = vmax.bf16 %v2681_v50, %v531_v38  ;;  %v549_v18 = vmax.bf16 %v2689_v58, %v532_v55  ;;  %v3892_v20 = vunpack.c.l.bf16 %v2652_v25 }
  0xa0   : > { %v2711_v12 = vpop.eup %1957  ;;  %1977 = vpow2.f32 %v705_v63  ;;  %v550_v23 = vmax.bf16 %v2692_v59, %v533_v9  ;;  %v551_v24 = vmax.bf16 %v2695_v61, %v534_v10  ;;  %v3901_v27 = vunpack.c.l.bf16 %v2655_v26 }
  0xa1   : > { %v2722_v21 = vpop.eup %1959  ;;  %1979 = vpow2.f32 %v707_v0  ;;  %v565_v15 = vmax.bf16 %v2706_v8, %v548_v14  ;;  %v566_v22 = vmax.bf16 %v2709_v11, %v549_v18  ;;  %v3896_v30 = vunpack.c.l.bf16 %v2662_v36 }
  0xa2   : > { %v1962_v28 = vpop.eup %1961  ;;  %1981 = vpow2.f32 %v709_v1  ;;  %v567_v33 = vmax.bf16 %v2716_v13, %v550_v23  ;;  %v568_v34 = vmax.bf16 %v2719_v19, %v551_v24  ;;  %v3895_v35 = vunpack.c.l.bf16 %v2669_v41 }
  0xa3   : > { %v1964_v32 = vpop.eup %1963  ;;  %v641_v29 = vadd.f32 %v1962_v28, %v2697_v62  ;;  %1983 = vpow2.f32 %v711_v7  ;;  %v2734_v42 = vunpack.c.l.bf16 %v565_v15  ;;  %v2736_v45 = vunpack.c.l.bf16 %v566_v22 }
  0xa4   : > { %v1966_v39 = vpop.eup %1965  ;;  %v642_v40 = vadd.f32 %v1964_v32, %v2699_v6  ;;  %v2740_v55 = vunpack.c.l.bf16 %v567_v33  ;;  %v2742_v63 = vunpack.c.l.bf16 %v568_v34  ;;  %v613_v0 = vunpack.c.l.bf16 %v2658_v31 }
  0xa5   : > { %v1968_v51 = vpop.eup %1967  ;;  %v643_v38 = vadd.f32 %v1966_v39, %v2711_v12  ;;  %v589_v9 = vsub.f32 %v3892_v20, %v2734_v42  ;;  %v590_v10 = vsub.f32 %v3901_v27, %v2736_v45  ;;  %v614_v14 = vunpack.c.l.bf16 %v2665_v37 }
  0xa6   : > { %v1970_v1 = vpop.eup %1969  ;;  %v644_v7 = vadd.f32 %v1968_v51, %v2722_v21  ;;  %v591_v24 = vsub.f32 %v3896_v30, %v2740_v55  ;;  %v592_v31 = vsub.f32 %v3895_v35, %v2742_v63  ;;  %v615_v28 = vunpack.c.l.bf16 %v2675_v46 }
  0xa7   : > { %v1972_v18 = vpop.eup %1971  ;;  %v681_v23 = vadd.f32 %v1970_v1, %v641_v29  ;;  %v601_v32 = vmul.f32 1.442695, %v589_v9  ;;  %v603_v33 = vmul.f32 1.442695, %v590_v10  ;;  %v616_v34 = vunpack.c.l.bf16 %v2678_v47 }
  0xa8   : > { %v1974_v15 = vpop.eup %1973  ;;  %v682_v22 = vadd.f32 %v1972_v18, %v642_v40  ;;  %v605_v51 = vmul.f32 1.442695, %v591_v24  ;;  %v607_v29 = vmul.f32 1.442695, %v592_v31  ;;  %v621_v1 = vsub.f32 %v613_v0, %v2734_v42 }
  0xa9   : > { %v1976_v39 = vpop.eup %1975  ;;  %v683_v37 = vadd.f32 %v1974_v15, %v643_v38  ;;  %1985 = vpow2.f32 %v601_v32  ;;  %v622_v16 = vsub.f32 %v614_v14, %v2736_v45  ;;  %v623_v35 = vsub.f32 %v615_v28, %v2740_v55 }
  0xaa   : > { %v1978_v20 = vpop.eup %1977  ;;  %v684_v17 = vadd.f32 %v1976_v39, %v644_v7  ;;  %1987 = vpow2.f32 %v603_v33  ;;  %v624_v40 = vsub.f32 %v616_v34, %v2742_v63  ;;  %v633_v47 = vmul.f32 1.442695, %v621_v1 }
  0xab   : > { %v1980_v46 = vpop.eup %1979  ;;  %v2764_v30 = vadd.f32 %v1978_v20, %v681_v23  ;;  %1989 = vpow2.f32 %v605_v51  ;;  %v635_v10 = vmul.f32 1.442695, %v622_v16  ;;  %v637_v0 = vmul.f32 1.442695, %v623_v35 }
  0xac   : > { %v1982_v9 = vpop.eup %1981  ;;  %v2767_v38 = vadd.f32 %v1980_v46, %v682_v22  ;;  %v639_v14 = vmul.f32 1.442695, %v624_v40  ;;  %v653_v24 = vunpack.c.l.bf16 %v2681_v50  ;;  %v654_v23 = vunpack.c.l.bf16 %v2689_v58 }
  0xad   : > { %3988 = vst [vmem:[#allocation38_spill] sm:$0xff] %v2764_v30  ;;  %v1984_v18 = vpop.eup %1983  ;;  %v2769_v7 = vadd.f32 %v1982_v9, %v683_v37  ;;  %1991 = vrcp.f32 %v2764_v30  ;;  %v655_v31 = vunpack.c.l.bf16 %v2692_v59  ;;  %v656_v16 = vunpack.c.l.bf16 %v2695_v61  ;;  %v2789_v61 = vld [vmem:[%s2499_s16 + $0x10] sm:$0xff]   ;;  %v2795_v37 = vld [vmem:[%s2499_s16 + $0x18] sm:$0xff]  }
  0xae   : > { %3989 = vst [vmem:[#allocation39_spill] sm:$0xff] %v2767_v38  ;;  %v2773_v20 = vadd.f32 %v1984_v18, %v684_v17  ;;  %1993 = vrcp.f32 %v2767_v38  ;;  %v661_v35 = vsub.f32 %v653_v24, %v2734_v42  ;;  %v693_v28 = vunpack.c.l.bf16 %v2706_v8  ;;  %3992 = vst [vmem:[#allocation42_spill] sm:$0xff] %v2789_v61  ;;  %v2806_v9 = vld [vmem:[%s2499_s16 + $0x50] sm:$0xff]  }
  0xaf   : > { %3990 = vst [vmem:[#allocation40_spill] sm:$0xff] %v2769_v7  ;;  %1995 = vrcp.f32 %v2769_v7  ;;  %v662_v17 = vsub.f32 %v654_v23, %v2736_v45  ;;  %v663_v50 = vsub.f32 %v655_v31, %v2740_v55  ;;  %v694_v15 = vunpack.c.l.bf16 %v2709_v11  ;;  %3993 = vst [vmem:[#allocation43_spill] sm:$0xff] %v2795_v37 }
  0xb0   : > { %3991 = vst [vmem:[#allocation41_spill] sm:$0xff] %v2773_v20  ;;  %1997 = vrcp.f32 %v2773_v20  ;;  %v664_v58 = vsub.f32 %v656_v16, %v2742_v63  ;;  %v673_v59 = vmul.f32 1.442695, %v661_v35  ;;  %v695_v22 = vunpack.c.l.bf16 %v2716_v13  ;;  %3994 = vst [vmem:[#allocation44_spill] sm:$0xff] %v2806_v9 }
  0xb1   : > { %1999 = vpow2.f32 %v607_v29  ;;  %v675_v32 = vmul.f32 1.442695, %v662_v17  ;;  %v677_v8 = vmul.f32 1.442695, %v663_v50  ;;  %v696_v33 = vunpack.c.l.bf16 %v2719_v19 }
  0xb2   : > { %2001 = vpow2.f32 %v633_v47  ;;  %v679_v34 = vmul.f32 1.442695, %v664_v58  ;;  %v701_v39 = vsub.f32 %v693_v28, %v2734_v42  ;;  %v702_v11 = vsub.f32 %v694_v15, %v2736_v45 }
  0xb3   : > { %2003 = vpow2.f32 %v635_v10  ;;  %v2797_v51 = vpop.eup %1985  ;;  %v703_v13 = vsub.f32 %v695_v22, %v2740_v55  ;;  %v704_v29 = vsub.f32 %v696_v33, %v2742_v63  ;;  %v3898_v1 = vunpack.c.l.bf16 %v2789_v61 }
  0xb4   : > { %2005 = vpow2.f32 %v637_v0  ;;  %v2802_v46 = vpop.eup %1987  ;;  %v713_v19 = vmul.f32 1.442695, %v701_v39  ;;  %v715_v40 = vmul.f32 1.442695, %v702_v11  ;;  %v3897_v47 = vunpack.c.h.bf16 %v2789_v61 }
  0xb5   : > { %2007 = vpow2.f32 %v639_v14  ;;  %v2808_v10 = vpop.eup %1989  ;;  %v717_v18 = vmul.f32 1.442695, %v703_v13  ;;  %v719_v0 = vmul.f32 1.442695, %v704_v29  ;;  %v3899_v24 = vunpack.c.l.bf16 %v2795_v37 }
  0xb6   : > { %2009 = vpow2.f32 %v673_v59  ;;  %vm3961_vm0 = vcmp.lt.s32.totalorder %v2613_v52, 9216  ;;  %v3900_v31 = vunpack.c.h.bf16 %v2795_v37  ;;  %v869_v14 = vsub.f32 %v3898_v1, %v2609_v48 }
  0xb7   : > { %v1992_v23 = vpop.eup %1991  ;;  %2011 = vpow2.f32 %v675_v32  ;;  %v870_v16 = vsub.f32 %v3897_v47, %v2611_v49  ;;  %vm3960_vm1 = vcmp.lt.s32.totalorder %v2622_v56, 9216  ;;  %v871_v17 = vsub.f32 %v3899_v24, %v2615_v53 }
  0xb8   : > { %v1994_v35 = vpop.eup %1993  ;;  %v737_v28 = vmul.f32 %v1992_v23, %v2764_v30  ;;  %2013 = vpow2.f32 %v677_v8  ;;  %v3903_v50 = vunpack.c.l.bf16 %v2806_v9  ;;  %vm3959_vm2 = vcmp.lt.s32.totalorder %v2624_v57, 9216  ;;  %v2984_v30 = vld [vmem:[%s2499_s16 + $0x38] sm:$0xff]  }
  0xb9   : > { %v1996_v15 = vpop.eup %1995  ;;  %v738_v58 = vmul.f32 %v1994_v35, %v2767_v38  ;;  %2015 = vpow2.f32 %v679_v34  ;;  %v872_v59 = vsub.f32 %v3900_v31, %v2617_v54  ;;  %v877_v22 = vmul.f32 1.442695, %v869_v14  ;;  %4005 = vst [vmem:[#allocation55_spill] sm:$0xff] %v2984_v30 }
  0xba   : > { %v1998_v32 = vpop.eup %1997  ;;  %vm3958_vm3 = vcmp.lt.s32.totalorder %v2629_v60, 9216  ;;  %v739_v8 = vmul.f32 %v1996_v15, %v2769_v7  ;;  %v745_v33 = vsub.f32 2.0, %v737_v28  ;;  %2017 = vpow2.f32 %v713_v19 }
  0xbb   : > { %v879_v39 = vmul.f32 1.442695, %v870_v16  ;;  %v2832_v11 = vpop.eup %1999  ;;  %v740_v13 = vmul.f32 %v1998_v32, %v2773_v20  ;;  %v746_v29 = vsub.f32 2.0, %v738_v58  ;;  %2019 = vpow2.f32 %v715_v40 }
  0xbc   : > { %v881_v34 = vmul.f32 1.442695, %v871_v17  ;;  %v2002_v47 = vpop.eup %2001  ;;  %v747_v1 = vsub.f32 2.0, %v739_v8  ;;  %v2835_v24 = vmul.f32 %v1992_v23, %v745_v33  ;;  %2021 = vpow2.f32 %v717_v18 }
  0xbd   : > { %v883_v14 = vmul.f32 1.442695, %v872_v59  ;;  %v2004_v31 = vpop.eup %2003  ;;  %v748_v27 = vsub.f32 2.0, %v740_v13  ;;  %v2837_v44 = vmul.f32 %v1994_v35, %v746_v29  ;;  %v645_v19 = vadd.f32 %v2002_v47, %v2797_v51 }
  0xbe   : > { %2023 = vpow2.f32 %v719_v0  ;;  %v2006_v16 = vpop.eup %2005  ;;  %v2840_v28 = vmul.f32 %v1996_v15, %v747_v1  ;;  %v2844_v40 = vmul.f32 %v2697_v62, %v2835_v24  ;;  %v646_v23 = vadd.f32 %v2004_v31, %v2802_v46  ;;  %v2863_v31 = vld [vmem:[%s2499_s16 + $0x58] sm:$0xff]  }
  0xbf   : > { %2025 = vpow2.f32 %v877_v22  ;;  %v2008_v18 = vpop.eup %2007  ;;  %v2847_v17 = vmul.f32 %v1998_v32, %v748_v27  ;;  %v2851_v35 = vmul.f32 %v2699_v6, %v2837_v44  ;;  %v647_v47 = vadd.f32 %v2006_v16, %v2808_v10  ;;  %3995 = vst [vmem:[#allocation45_spill] sm:$0xff] %v2863_v31 }
  0xc0   : > { %2027 = vpow2.f32 %v879_v39  ;;  %v2010_v0 = vpop.eup %2009  ;;  %v2856_v1 = vmul.f32 %v2711_v12, %v2840_v28  ;;  %v799_v62 = vsel %vm3961_vm0, %v2844_v40, 0.0  ;;  %v648_v27 = vadd.f32 %v2008_v18, %v2832_v11  ;;  %v2877_v39 = vld [vmem:[%s2499_s16 + $0x20] sm:$0xff]  }
  0xc1   : > { %2029 = vpow2.f32 %v881_v34  ;;  %v2012_v6 = vpop.eup %2011  ;;  %v2867_v15 = vmul.f32 %v2722_v21, %v2847_v17  ;;  %v800_v58 = vsel %vm3960_vm1, %v2851_v35, 0.0  ;;  %v685_v12 = vadd.f32 %v2010_v0, %v645_v19  ;;  %3996 = vst [vmem:[#allocation46_spill] sm:$0xff] %v2877_v39 }
  0xc2   : > { %2031 = vpow2.f32 %v883_v14  ;;  %v2014_v59 = vpop.eup %2013  ;;  %v801_v22 = vsel %vm3959_vm2, %v2856_v1, 0.0  ;;  %v807_v32 = vadd.f32 %v800_v58, %v799_v62  ;;  %v686_v8 = vadd.f32 %v2012_v6, %v646_v23  ;;  %v797_v6 = vld [vmem:[%s2518_s8] sm:$0xff] }
  0xc3   : > { %v3904_v33 = vunpack.c.h.bf16 %v2806_v9  ;;  %v2016_v21 = vpop.eup %2015  ;;  %v802_v13 = vsel %vm3958_vm3, %v2867_v15, 0.0  ;;  %v687_v29 = vadd.f32 %v2014_v59, %v647_v47  ;;  %v3906_v34 = vunpack.c.l.bf16 %v2863_v31 }
  0xc4   : > { %v3910_v14 = vunpack.c.h.bf16 %v2863_v31  ;;  %v2018_v19 = vpop.eup %2017  ;;  %v808_v16 = vadd.f32 %v807_v32, %v801_v22  ;;  %v688_v18 = vadd.f32 %v2016_v21, %v648_v27  ;;  %v873_v23 = vsub.f32 %v3903_v50, %v2734_v42  ;;  %v1672_v31 = vld [vmem:[%s2518_s8 + $0x18] sm:$0xff] }
  0xc5   : > { %v874_v0 = vsub.f32 %v3904_v33, %v2736_v45  ;;  %v2020_v62 = vpop.eup %2019  ;;  %v2891_v58 = vadd.f32 %v2018_v19, %v685_v12  ;;  %v875_v47 = vsub.f32 %v3906_v34, %v2740_v55  ;;  %v3913_v59 = vunpack.c.l.bf16 %v2877_v39 }
  0xc6   : > { %v876_v27 = vsub.f32 %v3910_v14, %v2742_v63  ;;  %v2022_v22 = vpop.eup %2021  ;;  %v809_v32 = vadd.f32 %v808_v16, %v802_v13  ;;  %v2900_v21 = vadd.f32 %v2020_v62, %v686_v8  ;;  %v885_v50 = vmul.f32 1.442695, %v873_v23 }
  0xc7   : > { %3997 = vst [vmem:[#allocation47_spill] sm:$0xff] %v2891_v58  ;;  %v887_v33 = vmul.f32 1.442695, %v874_v0  ;;  %v2905_v19 = vadd.f32 %v2022_v22, %v687_v29  ;;  %2033 = vrcp.f32 %v2891_v58  ;;  %v889_v34 = vmul.f32 1.442695, %v875_v47 }
  0xc8   : > { %3998 = vst [vmem:[#allocation48_spill] sm:$0xff] %v2900_v21  ;;  %v2024_v12 = vpop.eup %2023  ;;  %v891_v25 = vmul.f32 1.442695, %v876_v27  ;;  %v813_v14 = vadd.f32 %v809_v32, %v797_v6  ;;  %2035 = vrcp.f32 %v2900_v21  ;;  %v3912_v8 = vunpack.c.h.bf16 %v2877_v39 }
  0xc9   : > { %4000 = vst [vmem:[#allocation50_spill] sm:$0xff] %v2905_v19  ;;  %v2026_v61 = vpop.eup %2025  ;;  %v2908_v3 = vadd.f32 %v2024_v12, %v688_v18  ;;  %2037 = vrcp.f32 %v2905_v19  ;;  %v3914_v29 = vunpack.c.l.bf16 %v2903_v43  ;;  %v3915_v23 = vunpack.c.h.bf16 %v2903_v43 }
  0xca   : > { %v2028_v13 = vpop.eup %2027  ;;  %v2914_v16 = vmul.f32 %v2026_v61, %v2835_v24  ;;  %815 = vst [vmem:[%s2518_s8] sm:$0xff] %v813_v14  ;;  %v1004_v62 = vsub.f32 %v3913_v59, %v2609_v48  ;;  %v1005_v61 = vsub.f32 %v3912_v8, %v2611_v49  ;;  %v2954_v8 = vld [vmem:[%s2499_s16 + $0x68] sm:$0xff]  }
  0xcb   : > { %4001 = vst [vmem:[#allocation51_spill] sm:$0xff] %v2908_v3  ;;  %v2030_v0 = vpop.eup %2029  ;;  %2039 = vrcp.f32 %v2908_v3  ;;  %v2921_v18 = vmul.f32 %v2028_v13, %v2837_v44  ;;  %v1006_v27 = vsub.f32 %v3914_v29, %v2615_v53  ;;  %v1007_v12 = vsub.f32 %v3915_v23, %v2617_v54  ;;  %v2948_v13 = vld [vmem:[%s2499_s16 + $0x60] sm:$0xff]   ;;  %4003 = vst [vmem:[#allocation53_spill] sm:$0xff] %v2954_v8  ;;  %v2960_v23 = vld [vmem:[%s2499_s16 + $0x30] sm:$0xff]  }
  0xcc   : > { %v2032_v6 = vpop.eup %2031  ;;  %v2930_v47 = vmul.f32 %v2030_v0, %v2840_v28  ;;  %v933_v14 = vsel %vm3961_vm0, %v2914_v16, 0.0  ;;  %2041 = vpow2.f32 %v885_v50  ;;  %4002 = vst [vmem:[#allocation52_spill] sm:$0xff] %v2948_v13  ;;  %v1014_v59 = vmul.f32 1.442695, %v1005_v61  ;;  %4004 = vst [vmem:[#allocation54_spill] sm:$0xff] %v2960_v23 }
  0xcd   : > { %v2939_v22 = vmul.f32 %v2032_v6, %v2847_v17  ;;  %v934_v32 = vsel %vm3960_vm1, %v2921_v18, 0.0  ;;  %2043 = vpow2.f32 %v887_v33  ;;  %v1012_v6 = vmul.f32 1.442695, %v1004_v62 }
  0xce   : > { %v935_v50 = vsel %vm3959_vm2, %v2930_v47, 0.0  ;;  %v941_v0 = vadd.f32 %v934_v32, %v933_v14  ;;  %2045 = vpow2.f32 %v889_v34  ;;  %v1016_v29 = vmul.f32 1.442695, %v1006_v27 }
  0xcf   : > { %v936_v33 = vsel %vm3958_vm3, %v2939_v22, 0.0  ;;  %2047 = vpow2.f32 %v891_v25  ;;  %v1018_v20 = vmul.f32 1.442695, %v1007_v12  ;;  %v3922_v7 = vunpack.c.l.bf16 %v2948_v13 }
  0xd0   : > { %v942_v39 = vadd.f32 %v941_v0, %v935_v50  ;;  %2049 = vpow2.f32 %v1012_v6  ;;  %v3924_v34 = vunpack.c.h.bf16 %v2948_v13  ;;  %v3928_v62 = vunpack.c.l.bf16 %v2954_v8 }
  0xd1   : > { %2051 = vpow2.f32 %v1014_v59  ;;  %v3934_v14 = vunpack.c.h.bf16 %v2954_v8  ;;  %v2034_v32 = vpop.eup %2033  ;;  %v1008_v25 = vsub.f32 %v3922_v7, %v2734_v42 }
  0xd2   : > { %v943_v38 = vadd.f32 %v942_v39, %v936_v33  ;;  %2053 = vpow2.f32 %v1016_v29  ;;  %v2036_v27 = vpop.eup %2035  ;;  %v741_v12 = vmul.f32 %v2034_v32, %v2891_v58  ;;  %v1009_v59 = vsub.f32 %v3924_v34, %v2736_v45 }
  0xd3   : > { %2055 = vpow2.f32 %v1018_v20  ;;  %v1010_v39 = vsub.f32 %v3928_v62, %v2740_v55  ;;  %v2038_v29 = vpop.eup %2037  ;;  %v742_v50 = vmul.f32 %v2036_v27, %v2900_v21  ;;  %v1011_v6 = vsub.f32 %v3934_v14, %v2742_v63 }
  0xd4   : > { %v947_v0 = vadd.f32 %v1671_v2, %v943_v38  ;;  %v1020_v33 = vmul.f32 1.442695, %v1008_v25  ;;  %v743_v20 = vmul.f32 %v2038_v29, %v2905_v19  ;;  %v749_v61 = vsub.f32 2.0, %v741_v12  ;;  %v798_v25 = vld [vmem:[%s2518_s8 + $0x8] sm:$0xff] }
  0xd5   : > { %v2040_v7 = vpop.eup %2039  ;;  %v1022_v58 = vmul.f32 1.442695, %v1009_v59  ;;  %v1024_v34 = vmul.f32 1.442695, %v1010_v39  ;;  %v750_v43 = vsub.f32 2.0, %v742_v50 }
  0xd6   : > { %v2042_v13 = vpop.eup %2041  ;;  %v744_v62 = vmul.f32 %v2040_v7, %v2908_v3  ;;  %1673 = vst [vmem:[%s2518_s8 + $0x10] sm:$0xff] %v947_v0  ;;  %2057 = vpow2.f32 %v1020_v33  ;;  %v1026_v2 = vmul.f32 1.442695, %v1011_v6  ;;  %v751_v21 = vsub.f32 2.0, %v743_v20 }
  0xd7   : > { %v2044_v38 = vpop.eup %2043  ;;  %v2988_v8 = vmul.f32 %v2034_v32, %v749_v61  ;;  %2059 = vpow2.f32 %v1022_v58  ;;  %v2991_v59 = vmul.f32 %v2036_v27, %v750_v43 }
  0xd8   : > { %v2046_v14 = vpop.eup %2045  ;;  %v752_v12 = vsub.f32 2.0, %v744_v62  ;;  %2061 = vpow2.f32 %v1024_v34  ;;  %v2994_v3 = vmul.f32 %v2038_v29, %v751_v21 }
  0xd9   : > { %v2048_v19 = vpop.eup %2047  ;;  %v2998_v50 = vmul.f32 %v2797_v51, %v2988_v8  ;;  %v3001_v32 = vmul.f32 %v2042_v13, %v2988_v8  ;;  %2063 = vpow2.f32 %v1026_v2  ;;  %v3007_v43 = vmul.f32 %v2802_v46, %v2991_v59 }
  0xda   : > { %v2050_v58 = vpop.eup %2049  ;;  %v3003_v61 = vmul.f32 %v2040_v7, %v752_v12  ;;  %v3010_v34 = vmul.f32 %v2044_v38, %v2991_v59  ;;  %v3015_v51 = vmul.f32 %v2808_v10, %v2994_v3  ;;  %v3021_v7 = vmul.f32 %v2046_v14, %v2994_v3 }
  0xdb   : > { %v2052_v62 = vpop.eup %2051  ;;  %v803_v13 = vsel %vm3961_vm0, %v2998_v50, 0.0  ;;  %v937_v46 = vsel %vm3961_vm0, %v3001_v32, 0.0  ;;  %v804_v10 = vsel %vm3960_vm1, %v3007_v43, 0.0  ;;  %v3052_v12 = vmul.f32 %v2050_v58, %v2835_v24 }
  0xdc   : > { %v2054_v27 = vpop.eup %2053  ;;  %v3028_v29 = vmul.f32 %v2832_v11, %v3003_v61  ;;  %v3034_v0 = vmul.f32 %v2048_v19, %v3003_v61  ;;  %v938_v14 = vsel %vm3960_vm1, %v3010_v34, 0.0  ;;  %v805_v33 = vsel %vm3959_vm2, %v3015_v51, 0.0 }
  0xdd   : > { %v2056_v6 = vpop.eup %2055  ;;  %v810_v11 = vadd.f32 %v804_v10, %v803_v13  ;;  %v939_v20 = vsel %vm3959_vm2, %v3021_v7, 0.0  ;;  %v944_v2 = vadd.f32 %v938_v14, %v937_v46  ;;  %4006 = vst [vmem:[#allocation56_spill] sm:$0xff] %v3052_v12  ;;  %v3055_v21 = vmul.f32 %v2052_v62, %v2837_v44 }
  0xde   : > { %v806_v19 = vsel %vm3958_vm3, %v3028_v29, 0.0  ;;  %v940_v38 = vsel %vm3958_vm3, %v3034_v0, 0.0  ;;  %v3058_v39 = vmul.f32 %v2054_v27, %v2840_v28  ;;  %v3061_v46 = vmul.f32 %v2056_v6, %v2847_v17 }
  0xdf   : > { %4007 = vst [vmem:[#allocation57_spill] sm:$0xff] %v3055_v21  ;;  %v811_v13 = vadd.f32 %v810_v11, %v805_v33  ;;  %v945_v10 = vadd.f32 %v944_v2, %v939_v20  ;;  %v1068_v9 = vsel %vm3961_vm0, %v3052_v12, 0.0  ;;  %v1069_v58 = vsel %vm3960_vm1, %v3055_v21, 0.0 }
  0xe0   : > { %4008 = vst [vmem:[#allocation58_spill] sm:$0xff] %v3061_v46  ;;  %v2058_v14 = vpop.eup %2057  ;;  %v4009_v62 = vunpack.c.l.bf16 %v2960_v23  ;;  %v4010_v27 = vunpack.c.h.bf16 %v2960_v23  ;;  %v1070_v12 = vsel %vm3959_vm2, %v3058_v39, 0.0  ;;  %v1071_v21 = vsel %vm3958_vm3, %v3061_v46, 0.0 }
  0xe1   : > { %v2060_v11 = vpop.eup %2059  ;;  %v812_v20 = vadd.f32 %v811_v13, %v806_v19  ;;  %v946_v2 = vadd.f32 %v945_v10, %v940_v38  ;;  %v4011_v19 = vunpack.c.l.bf16 %v2984_v30 }
  0xe2   : > { %v1139_v33 = vsub.f32 %v4009_v62, %v2609_v48  ;;  %v1140_v6 = vsub.f32 %v4010_v27, %v2611_v49  ;;  %v2062_v37 = vpop.eup %2061  ;;  %v1076_v62 = vadd.f32 %v1069_v58, %v1068_v9  ;;  %v3084_v48 = vmul.f32 %v2058_v14, %v2988_v8  ;;  %v1699_v14 = vld [vmem:[%s2518_s8 + $0x20] sm:$0xff] }
  0xe3   : > { %v3087_v27 = vmul.f32 %v2060_v11, %v2991_v59  ;;  %v1141_v38 = vsub.f32 %v4011_v19, %v2615_v53  ;;  %v2064_v13 = vpop.eup %2063  ;;  %v814_v10 = vadd.f32 %v812_v20, %v798_v25  ;;  %v948_v49 = vadd.f32 %v1672_v31, %v946_v2  ;;  %v3109_v25 = vld [vmem:[%s2499_s16 + $0x70] sm:$0xff]  }
  0xe4   : > { %v3093_v23 = vmul.f32 %v2062_v37, %v2994_v3  ;;  %v4012_v9 = vunpack.c.h.bf16 %v2984_v30  ;;  %v1077_v46 = vadd.f32 %v1076_v62, %v1070_v12  ;;  %v3100_v11 = vmul.f32 %v2064_v13, %v3003_v61  ;;  %v3117_v62 = vld [vmem:[%s2499_s16 + $0x78] sm:$0xff]   ;;  %v487_v30 = vld [vmem:[%s2505_s2 + $0x8] sm:$0xff]  ;;  %s2097_s16 = scalar_lea.vmem %s3318_s26, 1024 }
  0xe5   : > { %v1072_v19 = vsel %vm3961_vm0, %v3084_v48, 0.0  ;;  %v1073_v31 = vsel %vm3960_vm1, %v3087_v27, 0.0  ;;  %816 = vst [vmem:[%s2518_s8 + $0x8] sm:$0xff] %v814_v10  ;;  %1674 = vst [vmem:[%s2518_s8 + $0x18] sm:$0xff] %v948_v49  ;;  %v1147_v20 = vmul.f32 1.442695, %v1139_v33  ;;  %v3954_v10 = vunpack.c.l.bf16 %v3109_v25  ;;  %p2098_p9 = scmp.ne.s32.totalorder %s3318_s26, %s2097_s16 }
  0xe6   : > { %v1142_v58 = vsub.f32 %v4012_v9, %v2617_v54  ;;  %v1074_v37 = vsel %vm3959_vm2, %v3093_v23, 0.0  ;;  %v1079_v12 = vadd.f32 %v1073_v31, %v1072_v19  ;;  %v1149_v2 = vmul.f32 1.442695, %v1140_v6  ;;  %v486_v6 = vld [vmem:[%s2505_s2] sm:$0xff]  ;;  %v1700_v31 = vld [vmem:[%s2518_s8 + $0x28] sm:$0xff] }
  0xe7   : > { %v1078_v13 = vadd.f32 %v1077_v46, %v1071_v21  ;;  %v1075_v9 = vsel %vm3958_vm3, %v3100_v11, 0.0  ;;  %v1151_v54 = vmul.f32 1.442695, %v1141_v38  ;;  %2065 = vpow2.f32 %v1147_v20  ;;  %p2099_p0 = pnand %p2098_p9, %p2469_p2 }
  0xe8   : > { %v1153_v53 = vmul.f32 1.442695, %v1142_v58  ;;  %v1080_v49 = vadd.f32 %v1079_v12, %v1074_v37  ;;  %v3957_v33 = vunpack.c.h.bf16 %v3109_v25  ;;  %2067 = vpow2.f32 %v1149_v2  ;;  %v488_v12 = vld [vmem:[%s2505_s2 + $0x10] sm:$0xff] }
  0xe9   : > { %v1082_v19 = vadd.f32 %v1699_v14, %v1078_v13  ;;  %v3955_v21 = vunpack.c.l.bf16 %v3117_v62  ;;  %v3956_v46 = vunpack.c.h.bf16 %v3117_v62  ;;  %2069 = vpow2.f32 %v1151_v54  ;;  %v489_v14 = vld [vmem:[%s2505_s2 + $0x18] sm:$0xff]  ;;  %p2100_p1 = pneg %p2099_p0 }
  0xea   : > { %v1081_v38 = vadd.f32 %v1080_v49, %v1075_v9  ;;  %v1143_v58 = vsub.f32 %v3954_v10, %v2734_v42  ;;  %v1144_v37 = vsub.f32 %v3957_v33, %v2736_v45  ;;  %2071 = vpow2.f32 %v1153_v53 }
  0xeb   : > { %1701 = vst [vmem:[%s2518_s8 + $0x20] sm:$0xff] %v1082_v19  ;;  %v1145_v20 = vsub.f32 %v3955_v21, %v2740_v55  ;;  %v1146_v54 = vsub.f32 %v3956_v46, %v2742_v63  ;;  %v3146_v2 = vsel %vm3961_vm0, %v486_v6, 4294967295  ;;  %v3150_v53 = vsel %vm3960_vm1, %v487_v30, 4294967295 }
  0xec   : > { %v1083_v13 = vadd.f32 %v1700_v31, %v1081_v38  ;;  %v1155_v9 = vmul.f32 1.442695, %v1143_v58  ;;  %v1157_v49 = vmul.f32 1.442695, %v1144_v37  ;;  %v3154_v21 = vsel %vm3959_vm2, %v488_v12, 4294967295  ;;  %v490_v38 = vld [vmem:[%s2505_s2 + $0x20] sm:$0xff] }
  0xed   : > { %v1159_v19 = vmul.f32 1.442695, %v1145_v20  ;;  %v1161_v10 = vmul.f32 1.442695, %v1146_v54  ;;  %v3158_v6 = vsel %vm3958_vm3, %v489_v14, 4294967295  ;;  %vm769_vm4 = vcmp.eq.s32.totalorder %v3146_v2, 0 }
  0xee   : > { %1702 = vst [vmem:[%s2518_s8 + $0x28] sm:$0xff] %v1083_v13  ;;  %2073 = vpow2.f32 %v1155_v9  ;;  %vm770_vm5 = vcmp.eq.s32.totalorder %v3150_v53, 0  ;;  %vm771_vm6 = vcmp.eq.s32.totalorder %v3154_v21, 0  ;;  %v779_v30 = vsel %vm769_vm4, %v2844_v40, 0.0  ;;  %v491_v58 = vld [vmem:[%s2505_s2 + $0x28] sm:$0xff]  ;;  %v492_v14 = vld [vmem:[%s2505_s2 + $0x30] sm:$0xff] }
  0xef   : > { %2075 = vpow2.f32 %v1157_v49  ;;  %v780_v31 = vsel %vm770_vm5, %v2851_v35, 0.0  ;;  %vm772_vm7 = vcmp.eq.s32.totalorder %v3158_v6, 0  ;;  %v781_v37 = vsel %vm771_vm6, %v2856_v1, 0.0  ;;  %v493_v20 = vld [vmem:[%s2505_s2 + $0x38] sm:$0xff]  ;;  %s2103_s2 = scalar_lea.vmem %s2102_s21, 2048 }
  0xf0   : > { %2077 = vpow2.f32 %v1159_v19  ;;  %v787_v12 = vadd.f32 %v780_v31, %v779_v30  ;;  %v782_v40 = vsel %vm772_vm7, %v2867_v15, 0.0  ;;  %v3183_v13 = vsel %vm3961_vm0, %v490_v38, 4294967295  ;;  %v777_v19 = vld [vmem:[%s2516_s11] sm:$0xff]  ;;  %p2105_p6 = scmp.lt.s32.totalorder %s2103_s2, %s2097_s16 }
  0xf1   : > { %2079 = vpow2.f32 %v1161_v10  ;;  %v2066_v54 = vpop.eup %2065  ;;  %v3187_v9 = vsel %vm3960_vm1, %v491_v58, 4294967295  ;;  %v3195_v10 = vsel %vm3959_vm2, %v492_v14, 4294967295  ;;  %v3199_v15 = vsel %vm3958_vm3, %v493_v20, 4294967295 }
  0xf2   : > { %v788_v35 = vadd.f32 %v787_v12, %v781_v37  ;;  %v2068_v49 = vpop.eup %2067  ;;  %v3190_v1 = vmul.f32 %v2066_v54, %v2835_v24  ;;  %vm773_vm8 = vcmp.eq.s32.totalorder %v3183_v13, 0  ;;  %vm774_vm9 = vcmp.eq.s32.totalorder %v3187_v9, 0  ;;  %p2106_p7 = por %p2105_p6, %p2104_p4 }
  0xf3   : > { %v2070_v30 = vpop.eup %2069  ;;  %v3202_v31 = vmul.f32 %v2068_v49, %v2837_v44  ;;  %vm775_vm10 = vcmp.eq.s32.totalorder %v3195_v10, 0  ;;  %v783_v44 = vsel %vm773_vm8, %v2998_v50, 0.0  ;;  %v784_v20 = vsel %vm774_vm9, %v3007_v43, 0.0 }
  0xf4   : > { %v789_v38 = vadd.f32 %v788_v35, %v782_v40  ;;  %v2072_v24 = vpop.eup %2071  ;;  %v3207_v58 = vmul.f32 %v2070_v30, %v2840_v28  ;;  %v1203_v37 = vsel %vm3961_vm0, %v3190_v1, 0.0  ;;  %vm776_vm11 = vcmp.eq.s32.totalorder %v3199_v15, 0  ;;  %p2107_p8 = pnand %p2106_p7, %p2100_p1 }
  0xf5   : > { %v3217_v12 = vmul.f32 %v2072_v24, %v2847_v17  ;;  %v1204_v14 = vsel %vm3960_vm1, %v3202_v31, 0.0  ;;  %v785_v17 = vsel %vm775_vm10, %v3015_v51, 0.0  ;;  %v790_v49 = vadd.f32 %v784_v20, %v783_v44  ;;  %v1727_v24 = vld [vmem:[%s2518_s8 + $0x30] sm:$0xff]  ;;  %v778_v44 = vld [vmem:[%s2516_s11 + $0x8] sm:$0xff] }
  0xf6   : > { %v793_v28 = vadd.f32 %v789_v38, %v777_v19  ;;  %v1205_v40 = vsel %vm3959_vm2, %v3207_v58, 0.0  ;;  %v1211_v54 = vadd.f32 %v1204_v14, %v1203_v37  ;;  %v786_v38 = vsel %vm776_vm11, %v3028_v29, 0.0 }
  0xf7   : > { %v1206_v35 = vsel %vm3958_vm3, %v3217_v12, 0.0  ;;  %v791_v14 = vadd.f32 %v790_v49, %v785_v17  ;;  %v2328_v20 = vmov 0.0   ;;  %vm901_vm12 = vcmp.eq.s32.totalorder %v3146_v2, 1 }
  0xf8   : > { %v2074_v50 = vpop.eup %2073  ;;  %795 = vst [vmem:[%s2516_s11] sm:$0xff] %v793_v28  ;;  %v1212_v19 = vadd.f32 %v1211_v54, %v1205_v40  ;;  %v1651_v29 = vsel %vm769_vm4, 1.0, %v2328_v20  ;;  %v1652_v54 = vsel %vm770_vm5, 1.0, %v2328_v20  ;;  %vm902_vm13 = vcmp.eq.s32.totalorder %v3150_v53, 1 }
  0xf9   : > { %v2076_v43 = vpop.eup %2075  ;;  %v3237_v30 = vmul.f32 %v2074_v50, %v2988_v8  ;;  %v792_v40 = vadd.f32 %v791_v14, %v786_v38  ;;  %v1657_v14 = vsel %vm775_vm10, 1.0, %v2328_v20  ;;  %vm903_vm14 = vcmp.eq.s32.totalorder %v3154_v21, 1 }
  0xfa   : > { %v2078_v51 = vpop.eup %2077  ;;  %v3244_v37 = vmul.f32 %v2076_v43, %v2991_v59  ;;  %v1213_v28 = vadd.f32 %v1212_v19, %v1206_v35  ;;  %v1654_v43 = vsel %vm772_vm7, 1.0, %v2328_v20  ;;  %v835_v19 = vadd.f32 %v1652_v54, %v1651_v29 }
  0xfb   : > { %v2080_v46 = vpop.eup %2079  ;;  %v3247_v33 = vmul.f32 %v2078_v51, %v2994_v3  ;;  %v1207_v8 = vsel %vm3961_vm0, %v3237_v30, 0.0  ;;  %v794_v49 = vadd.f32 %v792_v40, %v778_v44  ;;  %v1655_v51 = vsel %vm773_vm8, 1.0, %v2328_v20  ;;  %v817_v40 = vld [vmem:[%s2520_s14] sm:$0xff] }
  0xfc   : > { %v3257_v59 = vmul.f32 %v2080_v46, %v3003_v61  ;;  %v1208_v3 = vsel %vm3960_vm1, %v3244_v37, 0.0  ;;  %v1217_v17 = vadd.f32 %v1727_v24, %v1213_v28  ;;  %v1653_v61 = vsel %vm771_vm6, 1.0, %v2328_v20  ;;  %v1728_v28 = vld [vmem:[%s2518_s8 + $0x38] sm:$0xff] }
  0xfd   : > { %v1209_v50 = vsel %vm3959_vm2, %v3247_v33, 0.0  ;;  %v1214_v35 = vadd.f32 %v1208_v3, %v1207_v8  ;;  %v1656_v24 = vsel %vm774_vm9, 1.0, %v2328_v20  ;;  %796 = vst [vmem:[%s2516_s11 + $0x8] sm:$0xff] %v794_v49  ;;  %v836_v8 = vadd.f32 %v1653_v61, %v835_v19  ;;  %v818_v49 = vld [vmem:[%s2520_s14 + $0x8] sm:$0xff] }
  0xfe   : > { %v1210_v46 = vsel %vm3958_vm3, %v3257_v59, 0.0  ;;  %1729 = vst [vmem:[%s2518_s8 + $0x30] sm:$0xff] %v1217_v17  ;;  %v1658_v44 = vsel %vm776_vm11, 1.0, %v2328_v20  ;;  %v838_v29 = vadd.f32 %v1656_v24, %v1655_v51  ;;  %v912_v54 = vsel %vm901_vm12, %v2914_v16, 0.0 }
  0xff   : > { %v1215_v38 = vadd.f32 %v1214_v35, %v1209_v50  ;;  %v837_v17 = vadd.f32 %v1654_v43, %v836_v8  ;;  %v913_v35 = vsel %vm902_vm13, %v2921_v18, 0.0  ;;  %v914_v61 = vsel %vm903_vm14, %v2930_v47, 0.0 }
 0x100   : > { %v839_v50 = vadd.f32 %v1657_v14, %v838_v29  ;;  %vm904_vm15 = vcmp.eq.s32.totalorder %v3158_v6, 1  ;;  %v920_v19 = vadd.f32 %v913_v35, %v912_v54  ;;  %v4013_v43 = vunpack.c.l.bf16 %v2560_v4  ;;  %v1667_v14 = vld [vmem:[%s2516_s11 + $0x10] sm:$0xff] }
 0x101   : > { %v1216_v3 = vadd.f32 %v1215_v38, %v1210_v46  ;;  %v841_v16 = vadd.f32 %v837_v17, %v817_v40  ;;  %v915_v47 = vsel %vm904_vm15, %v2939_v22, 0.0  ;;  %v4014_v51 = vunpack.c.l.bf16 %v2563_v5 }
 0x102   : > { %v840_v18 = vadd.f32 %v1658_v44, %v839_v50  ;;  %v847_v38 = vsel %vm771_vm6, %v4013_v43, 0.0  ;;  %vm3964_vm3 = vcmp.eq.s32.totalorder %v3183_v13, 1  ;;  %vm906_vm2 = vcmp.eq.s32.totalorder %v3187_v9, 1 }
 0x103   : > { %v1218_v46 = vadd.f32 %v1728_v28, %v1216_v3  ;;  %v3332_v24 = vsel %vm772_vm7, %v4014_v51, 0.0  ;;  %v921_v28 = vadd.f32 %v920_v19, %v914_v61  ;;  %843 = vst [vmem:[%s2520_s14] sm:$0xff] %v841_v16  ;;  %vm907_vm1 = vcmp.eq.s32.totalorder %v3195_v10, 1 }
 0x104   : > { %v842_v8 = vadd.f32 %v840_v18, %v818_v49  ;;  %v916_v4 = vsel %vm3964_vm3, %v3001_v32, 0.0 }
 0x105   : > { %1730 = vst [vmem:[%s2518_s8 + $0x38] sm:$0xff] %v1218_v46 }
 0x106   : > { %2110 = shalt.err (!%p2107_p8)
}
 0x107   : > { %s2111_s29 = scalar_lea.hbm %s3316_s17, 1024  ;;  %s2115_s8 = scalar_lea.hbm %s3878_s3, 2048 }
 0x108   : > { %p2112_p10 = scmp.ne.s32.totalorder %s3316_s17, %s2111_s29  ;;  %p2116_p12 = scmp.lt.u32.totalorder %s3316_s17, %s3878_s3 }
 0x109   : > { %p2117_p13 = scmp.lt.u32.totalorder %s2115_s8, %s2111_s29  ;;  %p2119_p0 = scmp.lt.u32.totalorder %s2111_s29, %s3316_s17 }
 0x10a   : > { %p2113_p5 = pnand %p2112_p10, %p2469_p2 }
 0x10b   : > { %p2118_p9 = por %p2117_p13, %p2116_p12 }
 0x10c   : > { %p2114_p11 = pneg %p2113_p5 }
 0x10d   : > { %p2120_p1 = por %p2119_p0, %p2118_p9 }
 0x10f   : > { %p2121_p4 = pnand %p2120_p1, %p2114_p11 }
 0x111   : > { %2124 = shalt.err (!%p2121_p4)
}
 0x112   : > { %s2330_s10 = smov 128   ;;  %s2331_s24 = smov 8   ;;  %v4015_v5 = vunpack.c.l.bf16 %v2655_v26  ;;  %v922_v32 = vadd.f32 %v921_v28, %v915_v47  ;;  %v917_v44 = vsel %vm906_vm2, %v3010_v34, 0.0  ;;  %v918_v29 = vsel %vm907_vm1, %v3021_v7, 0.0  ;;  %844 = vst [vmem:[%s2520_s14 + $0x8] sm:$0xff] %v842_v8  ;;  %v4018_v7 = vld [vmem:[#allocation43_spill] sm:$0xff] }
 0x113   : > { %1830 = dma.vmem_to_hbm [thread:$0]  (%p2469_p2), %s3318_s26, 1024, %s3316_s17, %s3344_s4, %s2330_s10, %s2330_s10, %s2331_s24   ;;  %v4016_v3 = vunpack.c.l.bf16 %v2662_v36  ;;  %v4017_v26 = vunpack.c.l.bf16 %v2669_v41  ;;  %vm908_vm6 = vcmp.eq.s32.totalorder %v3199_v15, 1  ;;  %v923_v17 = vadd.f32 %v917_v44, %v916_v4  ;;  %v4020_v4 = vld [vmem:[#allocation56_spill] sm:$0xff] }
 0x114   : > { %v850_v22 = vsel %vm774_vm9, %v4015_v5, 0.0  ;;  %v926_v34 = vadd.f32 %v1667_v14, %v922_v32  ;;  %v919_v50 = vsel %vm908_vm6, %v3034_v0, 0.0  ;;  %v1677_v36 = vsel %vm901_vm12, 1.0, %v2328_v20  ;;  %v1668_v19 = vld [vmem:[%s2516_s11 + $0x18] sm:$0xff]  ;;  %v1675_v28 = vld [vmem:[%s2520_s14 + $0x10] sm:$0xff]  ;;  %s1339_s26 = sshll.u32 %s2516_s11, 4  ;;  %s3625_s26 = int_to_ptr.vmem [resolvable:$true] %s1339_s26 }
 0x115   : > { %v851_v40 = vsel %vm775_vm10, %v4016_v3, 0.0  ;;  %v852_v54 = vsel %vm776_vm11, %v4017_v26, 0.0  ;;  %v1678_v41 = vsel %vm902_vm13, 1.0, %v2328_v20  ;;  %v4019_v35 = vunpack.c.l.bf16 %v4018_v7  ;;  %v4021_v3 = vld [vmem:[#allocation57_spill] sm:$0xff]  ;;  %s4042_s17 = sld [smem:[#allocation59_spill]]  ;;  %s1371_s7 = sshll.u32 %s2520_s14, 4  ;;  %s3697_s7 = int_to_ptr.vmem [resolvable:$true] %s1371_s7 }
 0x116   : > { %v924_v46 = vadd.f32 %v923_v17, %v918_v29  ;;  %v1679_v49 = vsel %vm903_vm14, 1.0, %v2328_v20  ;;  %v970_v0 = vadd.f32 %v1678_v41, %v1677_v36  ;;  %1669 = vst [vmem:[%s2516_s11 + $0x10] sm:$0xff] %v926_v34  ;;  %v1680_v16 = vsel %vm904_vm15, 1.0, %v2328_v20  ;;  %s1311_s21 = scalar_lea.sflag [#allocation4], %s2512_s18  ;;  %s2332_s2 = smov [#allocation7]  }
 0x117   : > { %v982_v61 = vsel %vm903_vm14, %v4019_v35, %v847_v38  ;;  %v1681_v18 = vsel %vm3964_vm3, 1.0, %v2328_v20  ;;  %v1682_v47 = vsel %vm906_vm2, 1.0, %v2328_v20  ;;  %v1683_v43 = vsel %vm907_vm1, 1.0, %v2328_v20  ;;  %v4023_v35 = vld [vmem:[#allocation44_spill] sm:$0xff]  ;;  %s2129_s29 = sshll.u32 %s2332_s2, 4  ;;  %s2130_s29 = int_to_ptr.vmem [resolvable:$false] %s2129_s29 }
 0x118   : > { %v925_v38 = vadd.f32 %v924_v46, %v919_v50  ;;  %v971_v51 = vadd.f32 %v1679_v49, %v970_v0  ;;  %v973_v14 = vadd.f32 %v1682_v47, %v1681_v18  ;;  %vm1036_vm7 = vcmp.eq.s32.totalorder %v3146_v2, 2  ;;  %v1676_v50 = vld [vmem:[%s2520_s14 + $0x18] sm:$0xff]  ;;  %s2131_s20 = scalar_lea.vmem %s2130_s29, 2048  ;;  %p2132_p10 = scmp.lt.s32.totalorder %s3625_s26, %s2130_s29 }
 0x119   : > { %v1684_v8 = vsel %vm908_vm6, 1.0, %v2328_v20  ;;  %vm3963_vm9 = vcmp.eq.s32.totalorder %v3150_v53, 2  ;;  %vm1038_vm10 = vcmp.eq.s32.totalorder %v3154_v21, 2  ;;  %v1047_v5 = vsel %vm1036_vm7, %v4020_v4, 0.0 }
 0x11a   : > { %v927_v32 = vadd.f32 %v1668_v19, %v925_v38  ;;  %v972_v44 = vadd.f32 %v1680_v16, %v971_v51  ;;  %v974_v29 = vadd.f32 %v1683_v43, %v973_v14  ;;  %v1048_v26 = vsel %vm3963_vm9, %v4021_v3, 0.0  ;;  %v4025_v19 = vld [vmem:[#allocation58_spill] sm:$0xff]  ;;  %v4026_v16 = vld [vmem:[#allocation45_spill] sm:$0xff]  ;;  %v1695_v51 = vld [vmem:[%s2516_s11 + $0x20] sm:$0xff] }
 0x11b   : > { %v4022_v17 = vunpack.c.h.bf16 %v4018_v7  ;;  %vm1039_vm11 = vcmp.eq.s32.totalorder %v3158_v6, 2  ;;  %v1049_v36 = vsel %vm1038_vm10, %v3058_v39, 0.0  ;;  %v1055_v41 = vadd.f32 %v1048_v26, %v1047_v5  ;;  %s3623_s16 = scalar_lea.hbm %s4042_s17, %s3295_s5 }
 0x11c   : > { %1670 = vst [vmem:[%s2516_s11 + $0x18] sm:$0xff] %v927_v32  ;;  %v4024_v46 = vunpack.c.h.bf16 %v4023_v35  ;;  %v976_v0 = vadd.f32 %v1675_v28, %v972_v44  ;;  %v975_v7 = vadd.f32 %v1684_v8, %v974_v29  ;;  %v4027_v18 = vunpack.c.l.bf16 %v4026_v16  ;;  %v4029_v8 = vld [vmem:[#allocation49_spill] sm:$0xff] }
 0x11d   : > { %v983_v34 = vsel %vm904_vm15, %v4022_v17, %v3332_v24  ;;  %v1050_v24 = vsel %vm1039_vm11, %v4025_v19, 0.0  ;;  %v4028_v39 = vunpack.c.h.bf16 %v4026_v16  ;;  %vm1041_vm14 = vcmp.eq.s32.totalorder %v3187_v9, 2 }
 0x11e   : > { %v985_v49 = vsel %vm906_vm2, %v4024_v46, %v850_v22  ;;  %v3456_v47 = vsel %vm907_vm1, %v4027_v18, %v851_v40  ;;  %v1056_v22 = vadd.f32 %v1055_v41, %v1049_v36  ;;  %vm3962_vm2 = vcmp.eq.s32.totalorder %v3183_v13, 2  ;;  %1685 = vst [vmem:[%s2520_s14 + $0x10] sm:$0xff] %v976_v0  ;;  %v1696_v41 = vld [vmem:[%s2516_s11 + $0x28] sm:$0xff]  ;;  %v1703_v18 = vld [vmem:[%s2520_s14 + $0x20] sm:$0xff] }
 0x11f   : > { %v3462_v43 = vsel %vm908_vm6, %v4028_v39, %v852_v54  ;;  %v977_v38 = vadd.f32 %v1676_v50, %v975_v7  ;;  %vm1042_vm15 = vcmp.eq.s32.totalorder %v3195_v10, 2  ;;  %v1051_v40 = vsel %vm3962_vm2, %v3084_v48, 0.0 }
 0x120   : > { %v1057_v14 = vadd.f32 %v1056_v22, %v1050_v24  ;;  %vm1043_vm1 = vcmp.eq.s32.totalorder %v3199_v15, 2  ;;  %v1052_v54 = vsel %vm1041_vm14, %v3087_v27, 0.0  ;;  %v1053_v28 = vsel %vm1042_vm15, %v3093_v23, 0.0  ;;  %v4032_v23 = vld [vmem:[#allocation52_spill] sm:$0xff] }
 0x121   : > { %1686 = vst [vmem:[%s2520_s14 + $0x18] sm:$0xff] %v977_v38  ;;  %v4030_v4 = vunpack.c.l.bf16 %v4029_v8  ;;  %v4031_v48 = vunpack.c.h.bf16 %v4029_v8  ;;  %v1054_v27 = vsel %vm1043_vm1, %v3100_v11, 0.0  ;;  %v1058_v44 = vadd.f32 %v1052_v54, %v1051_v40 }
 0x122   : > { %v1061_v29 = vadd.f32 %v1695_v51, %v1057_v14  ;;  %v4033_v3 = vunpack.c.h.bf16 %v4032_v23  ;;  %v1706_v17 = vsel %vm3963_vm9, 1.0, %v2328_v20  ;;  %v1707_v11 = vsel %vm1038_vm10, 1.0, %v2328_v20  ;;  %v1704_v14 = vld [vmem:[%s2520_s14 + $0x28] sm:$0xff] }
 0x123   : > { %v3484_v5 = vsel %vm1038_vm10, %v4030_v4, %v982_v61  ;;  %v3490_v32 = vsel %vm1039_vm11, %v4031_v48, %v983_v34  ;;  %v1705_v61 = vsel %vm1036_vm7, 1.0, %v2328_v20  ;;  %v1059_v34 = vadd.f32 %v1058_v44, %v1053_v28 }
 0x124   : > { %v3499_v26 = vsel %vm1041_vm14, %v4033_v3, %v985_v49  ;;  %v1708_v50 = vsel %vm1039_vm11, 1.0, %v2328_v20  ;;  %v1105_v36 = vadd.f32 %v1706_v17, %v1705_v61  ;;  %1697 = vst [vmem:[%s2516_s11 + $0x20] sm:$0xff] %v1061_v29  ;;  %v1709_v46 = vsel %vm3962_vm2, 1.0, %v2328_v20 }
 0x125   : > { %v1710_v49 = vsel %vm1041_vm14, 1.0, %v2328_v20  ;;  %v1711_v0 = vsel %vm1042_vm15, 1.0, %v2328_v20  ;;  %v1712_v7 = vsel %vm1043_vm1, 1.0, %v2328_v20  ;;  %v1060_v19 = vadd.f32 %v1059_v34, %v1054_v27  ;;  %v1723_v27 = vld [vmem:[%s2516_s11 + $0x30] sm:$0xff] }
 0x126   : > { %v1106_v24 = vadd.f32 %v1707_v11, %v1105_v36  ;;  %v1108_v16 = vadd.f32 %v1710_v49, %v1709_v46  ;;  %vm1171_vm6 = vcmp.eq.s32.totalorder %v3146_v2, 3  ;;  %vm1172_vm10 = vcmp.eq.s32.totalorder %v3150_v53, 3  ;;  %v1724_v46 = vld [vmem:[%s2516_s11 + $0x38] sm:$0xff] }
 0x127   : > { %vm1173_vm11 = vcmp.eq.s32.totalorder %v3154_v21, 3  ;;  %vm1174_vm14 = vcmp.eq.s32.totalorder %v3158_v6, 3  ;;  %v1182_v39 = vsel %vm1171_vm6, %v3190_v1, 0.0  ;;  %v1062_v22 = vadd.f32 %v1696_v41, %v1060_v19  ;;  %v4043_v21 = vld [vmem:[#allocation31_spill] sm:$0xff] }
 0x128   : > { %v1107_v38 = vadd.f32 %v1708_v50, %v1106_v24  ;;  %v1109_v51 = vadd.f32 %v1711_v0, %v1108_v16  ;;  %v1183_v40 = vsel %vm1172_vm10, %v3202_v31, 0.0  ;;  %v1184_v54 = vsel %vm1173_vm11, %v3207_v58, 0.0 }
 0x129   : > { %v1185_v28 = vsel %vm1174_vm14, %v3217_v12, 0.0  ;;  %v1190_v8 = vadd.f32 %v1183_v40, %v1182_v39  ;;  %vm1175_vm0 = vcmp.eq.s32.totalorder %v3183_v13, 3  ;;  %1698 = vst [vmem:[%s2516_s11 + $0x28] sm:$0xff] %v1062_v22  ;;  %vm1176_vm2 = vcmp.eq.s32.totalorder %v3187_v9, 3  ;;  %v1731_v39 = vld [vmem:[%s2520_s14 + $0x30] sm:$0xff] }
 0x12a   : > { %v1111_v1 = vadd.f32 %v1703_v18, %v1107_v38  ;;  %v1110_v4 = vadd.f32 %v1712_v7, %v1109_v51  ;;  %vm1177_vm9 = vcmp.eq.s32.totalorder %v3195_v10, 3  ;;  %vm1178_vm3 = vcmp.eq.s32.totalorder %v3199_v15, 3  ;;  %v4037_v38 = vld [vmem:[#allocation55_spill] sm:$0xff] }
 0x12b   : > { %v1191_v31 = vadd.f32 %v1190_v8, %v1184_v54  ;;  %v1186_v58 = vsel %vm1175_vm0, %v3237_v30, 0.0  ;;  %v1187_v12 = vsel %vm1176_vm2, %v3244_v37, 0.0  ;;  %v1188_v44 = vsel %vm1177_vm9, %v3247_v33, 0.0  ;;  %v4034_v33 = vld [vmem:[#allocation53_spill] sm:$0xff]  ;;  %v4040_v54 = vld [vmem:[#allocation38_spill] sm:$0xff] }
 0x12c   : > { %1713 = vst [vmem:[%s2520_s14 + $0x20] sm:$0xff] %v1111_v1  ;;  %v1112_v48 = vadd.f32 %v1704_v14, %v1110_v4  ;;  %v1189_v29 = vsel %vm1178_vm3, %v3257_v59, 0.0  ;;  %v1193_v3 = vadd.f32 %v1187_v12, %v1186_v58  ;;  %v1733_v30 = vsel %vm1171_vm6, 1.0, %v2328_v20  ;;  %v4041_v1 = vld [vmem:[#allocation39_spill] sm:$0xff]  ;;  %v4045_v4 = vld [vmem:[#allocation40_spill] sm:$0xff] }
 0x12d   : > { %v1192_v61 = vadd.f32 %v1191_v31, %v1185_v28  ;;  %v1734_v37 = vsel %vm1172_vm10, 1.0, %v2328_v20  ;;  %v1735_v17 = vsel %vm1173_vm11, 1.0, %v2328_v20  ;;  %v4035_v34 = vunpack.c.l.bf16 %v4034_v33 }
 0x12e   : > { %1714 = vst [vmem:[%s2520_s14 + $0x28] sm:$0xff] %v1112_v48  ;;  %v1194_v11 = vadd.f32 %v1193_v3, %v1188_v44  ;;  %v1240_v50 = vadd.f32 %v1734_v37, %v1733_v30  ;;  %v1737_v36 = vsel %vm1175_vm0, 1.0, %v2328_v20  ;;  %v1736_v49 = vsel %vm1174_vm14, 1.0, %v2328_v20  ;;  %v4052_v30 = vld [vmem:[#allocation47_spill] sm:$0xff] }
 0x12f   : > { %v1121_v59 = vsel %vm1042_vm15, %v4035_v34, %v3456_v47  ;;  %v1196_v41 = vadd.f32 %v1723_v27, %v1192_v61  ;;  %v1738_v0 = vsel %vm1176_vm2, 1.0, %v2328_v20  ;;  %v1739_v47 = vsel %vm1177_vm9, 1.0, %v2328_v20 }
 0x130   : > { %v4036_v7 = vunpack.c.h.bf16 %v4034_v33  ;;  %v1195_v24 = vadd.f32 %v1194_v11, %v1189_v29  ;;  %v1241_v16 = vadd.f32 %v1735_v17, %v1240_v50  ;;  %v1243_v18 = vadd.f32 %v1738_v0, %v1737_v36  ;;  %v4048_v29 = vld [vmem:[#allocation41_spill] sm:$0xff] }
 0x131   : > { %1725 = vst [vmem:[%s2516_s11 + $0x30] sm:$0xff] %v1196_v41  ;;  %v1740_v22 = vsel %vm1178_vm3, 1.0, %v2328_v20  ;;  %v4038_v51 = vunpack.c.l.bf16 %v4037_v38  ;;  %2081 = vlog2.f32 %v4040_v54  ;;  %v4046_v31 = vunpack.c.h.bf16 %v3109_v25 }
 0x132   : > { %v1122_v19 = vsel %vm1043_vm1, %v4036_v7, %v3462_v43  ;;  %v4039_v43 = vunpack.c.h.bf16 %v4037_v38  ;;  %v1197_v28 = vadd.f32 %v1724_v46, %v1195_v24  ;;  %v1242_v8 = vadd.f32 %v1736_v49, %v1241_v16 }
 0x133   : > { %v3608_v40 = vsel %vm1173_vm11, %v4038_v51, %v3484_v5  ;;  %v1244_v20 = vadd.f32 %v1739_v47, %v1243_v18  ;;  %2083 = vlog2.f32 %v4041_v1  ;;  %v4044_v5 = vunpack.c.l.bf16 %v4043_v21 }
 0x134   : > { %v3615_v14 = vsel %vm1174_vm14, %v4039_v43, %v3490_v32  ;;  %v1732_v32 = vld [vmem:[%s2520_s14 + $0x38] sm:$0xff]  ;;  %2085 = vlog2.f32 %v4045_v4  ;;  %v3638_v58 = vsel %vm1176_vm2, %v4046_v31, %v3499_v26  ;;  %v4047_v12 = vunpack.c.l.bf16 %v3117_v62  ;;  %1726 = vst [vmem:[%s2516_s11 + $0x38] sm:$0xff] %v1197_v28  ;;  %v4050_v26 = vld [vmem:[#allocation32_spill] sm:$0xff]  ;;  %s2125_s11 = scalar_lea.vmem %s3625_s26, 1024 }
 0x135   : > { %v845_v6 = vsel %vm769_vm4, %v4044_v5, 0.0  ;;  %v1246_v27 = vadd.f32 %v1731_v39, %v1242_v8  ;;  %v1245_v44 = vadd.f32 %v1740_v22, %v1244_v20  ;;  %2087 = vlog2.f32 %v4048_v29  ;;  %p2126_p6 = scmp.ne.s32.totalorder %s3625_s26, %s2125_s11  ;;  %p2133_p5 = scmp.lt.s32.totalorder %s2131_s20, %s2125_s11 }
 0x136   : > { %v3644_v48 = vsel %vm1177_vm9, %v4047_v12, %v1121_v59  ;;  %v4049_v3 = vunpack.c.h.bf16 %v3117_v62  ;;  %v4051_v61 = vunpack.c.l.bf16 %v4050_v26  ;;  %2089 = vlog2.f32 %v4052_v30 }
 0x137   : > { %p2127_p7 = pnand %p2126_p6, %p2469_p2  ;;  %p2134_p11 = por %p2133_p5, %p2132_p10 }
 0x138   : > { %v3653_v9 = vsel %vm1178_vm3, %v4049_v3, %v1122_v19  ;;  %v846_v10 = vsel %vm770_vm5, %v4051_v61, 0.0 }
 0x139   : > { %p2128_p8 = pneg %p2127_p7 }
 0x13b   : > { %p2135_p12 = pnand %p2134_p11, %p2128_p8 }
 0x13d   : > { %2138 = shalt.err (!%p2135_p12)
}
 0x13e   : > { %s2139_s6 = scalar_lea.hbm %s3623_s16, 1024  ;;  %s2143_s30 = scalar_lea.hbm %s4042_s17, 2048 }
 0x13f   : > { %p2140_p13 = scmp.ne.s32.totalorder %s3623_s16, %s2139_s6  ;;  %p2144_p1 = scmp.lt.u32.totalorder %s3623_s16, %s4042_s17 }
 0x140   : > { %p2145_p4 = scmp.lt.u32.totalorder %s2143_s30, %s2139_s6  ;;  %p2147_p7 = scmp.lt.u32.totalorder %s2139_s6, %s3623_s16 }
 0x141   : > { %p2141_p9 = pnand %p2140_p13, %p2469_p2 }
 0x142   : > { %p2146_p6 = por %p2145_p4, %p2144_p1 }
 0x143   : > { %p2142_p0 = pneg %p2141_p9 }
 0x144   : > { %p2148_p8 = por %p2147_p7, %p2146_p6 }
 0x146   : > { %p2149_p10 = pnand %p2148_p8, %p2142_p0 }
 0x148   : > { %2152 = shalt.err (!%p2149_p10)
}
 0x149   : > { %1829 = dma.vmem_to_hbm [thread:$0]  (%p2469_p2), %s3625_s26, 1024, %s3623_s16, %s1311_s21, %s2330_s10, %s2330_s10, %s2331_s24   ;;  %v1247_v62 = vadd.f32 %v1732_v32, %v1245_v44  ;;  %v4053_v15 = vld [vmem:[#allocation48_spill] sm:$0xff]  ;;  %v4055_v37 = vld [vmem:[#allocation42_spill] sm:$0xff]  ;;  %v4058_v59 = vld [vmem:[#allocation37_spill] sm:$0xff] }
 0x14a   : > { %1741 = vst [vmem:[%s2520_s14 + $0x30] sm:$0xff] %v1246_v27  ;;  %2091 = vlog2.f32 %v4053_v15  ;;  %s4054_s29 = sld [smem:[#allocation60_spill]]  ;;  %v4056_v17 = vunpack.c.l.bf16 %v4055_v37  ;;  %v4057_v34 = vld [vmem:[#allocation50_spill] sm:$0xff]  ;;  %v4059_v11 = vunpack.c.l.bf16 %v4058_v59  ;;  %v4060_v36 = vunpack.c.h.bf16 %v4055_v37  ;;  %v4061_v46 = vld [vmem:[#allocation51_spill] sm:$0xff]  ;;  %s2333_s26 = smov [#allocation10]  }
 0x14b   : > { %2093 = vlog2.f32 %v4057_v34  ;;  %1742 = vst [vmem:[%s2520_s14 + $0x38] sm:$0xff] %v1247_v62  ;;  %s2157_s16 = sshll.u32 %s2333_s26, 4  ;;  %s2158_s16 = int_to_ptr.vmem [resolvable:$false] %s2157_s16 }
 0x14c   : > { %v980_v33 = vsel %vm901_vm12, %v4056_v17, %v845_v6  ;;  %v849_v50 = vsel %vm773_vm8, %v4059_v11, 0.0  ;;  %v981_v41 = vsel %vm902_vm13, %v4060_v36, %v846_v10  ;;  %2095 = vlog2.f32 %v4061_v46  ;;  %s2159_s21 = scalar_lea.vmem %s2158_s16, 2048  ;;  %p2160_p13 = scmp.lt.s32.totalorder %s3697_s7, %s2158_s16 }
 0x150   : > { %s3693_s20 = scalar_lea.hbm %s4054_s29, %s3295_s5  ;;  %s2153_s5 = scalar_lea.vmem %s3697_s7, 1024 }
 0x151   : > { %p2154_p5 = scmp.ne.s32.totalorder %s3697_s7, %s2153_s5  ;;  %p2161_p9 = scmp.lt.s32.totalorder %s2159_s21, %s2153_s5 }
 0x153   : > { %p2155_p11 = pnand %p2154_p5, %p2469_p2  ;;  %p2162_p0 = por %p2161_p9, %p2160_p13 }
 0x155   : > { %p2156_p12 = pneg %p2155_p11 }
 0x157   : > { %p2163_p1 = pnand %p2162_p0, %p2156_p12 }
 0x159   : > { %2166 = shalt.err (!%p2163_p1)
}
 0x15a   : > { %s2167_s14 = scalar_lea.hbm %s3693_s20, 1024  ;;  %s2171_s15 = scalar_lea.hbm %s4054_s29, 2048 }
 0x15b   : > { %p2168_p4 = scmp.ne.s32.totalorder %s3693_s20, %s2167_s14  ;;  %p2172_p8 = scmp.lt.u32.totalorder %s3693_s20, %s4054_s29 }
 0x15c   : > { %p2173_p10 = scmp.lt.u32.totalorder %s2171_s15, %s2167_s14  ;;  %p2175_p11 = scmp.lt.u32.totalorder %s2167_s14, %s3693_s20 }
 0x15d   : > { %p2169_p6 = pnand %p2168_p4, %p2469_p2 }
 0x15e   : > { %p2174_p5 = por %p2173_p10, %p2172_p8 }
 0x15f   : > { %p2170_p7 = pneg %p2169_p6 }
 0x160   : > { %p2176_p12 = por %p2175_p11, %p2174_p5 }
 0x162   : > { %p2177_p13 = pnand %p2176_p12, %p2170_p7 }
 0x164   : > { %2180 = shalt.err (!%p2177_p13)
}
 0x165   : > { %1831 = dma.vmem_to_hbm [thread:$0]  (%p2469_p2), %s3697_s7, 1024, %s3693_s20, %s3344_s4, %s2330_s10, %s2330_s10, %s2331_s24   ;;  %v4062_v49 = vld [vmem:[#allocation46_spill] sm:$0xff]  ;;  %v2082_v7 = vpop.eup %2081  ;;  %v4064_v19 = vunpack.c.l.bf16 %v4023_v35  ;;  %vm4065_vm3 = vcmp.eq.s32.totalorder %v3183_v13, 1  ;;  %vm4067_vm4 = vcmp.eq.s32.totalorder %v3150_v53, 2  ;;  %v4070_v35 = vunpack.c.l.bf16 %v4032_v23  ;;  %v4073_v6 = vld [vmem:[#allocation33_spill] sm:$0xff]  ;;  %v4075_v44 = vld [vmem:[#allocation35_spill] sm:$0xff] }
 0x166   : > { %v4063_v0 = vunpack.c.l.bf16 %v4062_v49  ;;  %v4066_v16 = vunpack.c.h.bf16 %v4062_v49  ;;  %v2084_v39 = vpop.eup %2083  ;;  %v1261_v22 = vmul.f32 0.6931472, %v2082_v7  ;;  %v4068_v51 = vld [vmem:[#allocation54_spill] sm:$0xff]  ;;  %vm4071_vm5 = vcmp.eq.s32.totalorder %v3183_v13, 2  ;;  %v4076_v61 = vld [vmem:[#allocation36_spill] sm:$0xff]  ;;  %v1258_v7 = vld [vmem:[%s2522_s13] sm:$0xff] }
 0x167   : > { %v984_v24 = vsel %vm4065_vm3, %v4064_v19, %v849_v50  ;;  %v2086_v38 = vpop.eup %2085  ;;  %v4069_v43 = vunpack.c.l.bf16 %v4068_v51  ;;  %v1263_v28 = vmul.f32 0.6931472, %v2084_v39  ;;  %v4072_v1 = vunpack.c.h.bf16 %v4068_v51  ;;  %v4074_v12 = vld [vmem:[#allocation34_spill] sm:$0xff]  ;;  %s1766_s4 = sshll.u32 %s2303_s25, 8  ;;  %s1387_s7 = sshll.u32 %s2522_s13, 4  ;;  %s3806_s7 = int_to_ptr.vmem [resolvable:$true] %s1387_s7 }
 0x168   : > { %v1115_v47 = vsel %vm1036_vm7, %v4063_v0, %v980_v33  ;;  %v1116_v18 = vsel %vm4067_vm4, %v4066_v16, %v981_v41  ;;  %v2088_v8 = vpop.eup %2087  ;;  %v1119_v20 = vsel %vm4071_vm5, %v4070_v35, %v984_v24  ;;  %v1265_v5 = vmul.f32 0.6931472, %v2086_v38  ;;  %s4086_s2 = sld [smem:[#allocation61_spill]]  ;;  %s1326_s5 = scalar_lea.sflag [#allocation12], %s2512_s18 }
 0x169   : > { %v1250_v54 = vsel %vm1171_vm6, %v4069_v43, %v1115_v47  ;;  %v1251_v21 = vsel %vm1172_vm10, %v4072_v1, %v1116_v18  ;;  %v1276_v32 = vadd.f32 %v1261_v22, %v4073_v6  ;;  %v2090_v4 = vpop.eup %2089  ;;  %v1267_v31 = vmul.f32 0.6931472, %v2088_v8  ;;  %v1259_v18 = vld [vmem:[%s2522_s13 + $0x8] sm:$0xff]  ;;  %s2181_s26 = scalar_lea.vmem %s3806_s7, 256  ;;  %s2334_s25 = smov [#allocation11]  }
 0x16a   : > { %v1277_v2 = vadd.f32 %v1263_v28, %v4074_v12  ;;  %v2092_v27 = vpop.eup %2091  ;;  %v1278_v29 = vadd.f32 %v1265_v5, %v4075_v44  ;;  %v1269_v23 = vmul.f32 0.6931472, %v2090_v4  ;;  %v4077_v62 = vunpack.c.l.bf16 %v3109_v25  ;;  %p2182_p9 = scmp.ne.s32.totalorder %s3806_s7, %s2181_s26  ;;  %s2185_s16 = sshll.u32 %s2334_s25, 4  ;;  %s2186_s16 = int_to_ptr.vmem [resolvable:$false] %s2185_s16 }
 0x16b   : > { %v1284_v3 = vsub.f32 %v1276_v32, %v1250_v54  ;;  %v2094_v26 = vpop.eup %2093  ;;  %v1279_v10 = vadd.f32 %v1267_v31, %v4076_v61  ;;  %v1271_v15 = vmul.f32 0.6931472, %v2092_v27  ;;  %vm4078_vm8 = vcmp.lt.s32.totalorder %v2613_v52, 9216  ;;  %s2187_s21 = scalar_lea.vmem %s2186_s16, 512  ;;  %p2188_p4 = scmp.lt.s32.totalorder %s3806_s7, %s2186_s16 }
 0x16c   : > { %v1285_v30 = vsub.f32 %v1277_v2, %v1251_v21  ;;  %v1254_v53 = vsel %vm1175_vm0, %v4077_v62, %v1119_v20  ;;  %v2096_v37 = vpop.eup %2095  ;;  %v1286_v17 = vsub.f32 %v1278_v29, %v3608_v40  ;;  %v1273_v34 = vmul.f32 0.6931472, %v2094_v26  ;;  %vm4082_vm7 = vmmov %vm4078_vm8  ;;  %p2183_p0 = pnand %p2182_p9, %p2469_p2  ;;  %p2189_p6 = scmp.lt.s32.totalorder %s2187_s21, %s2181_s26 }
 0x16d   : > { %v1292_v33 = vsel %vm4078_vm8, %v1284_v3, 0.0  ;;  %v1280_v59 = vadd.f32 %v1269_v23, %v2734_v42  ;;  %v1287_v11 = vsub.f32 %v1279_v10, %v3615_v14  ;;  %vm4079_vm12 = vcmp.lt.s32.totalorder %v2622_v56, 9216 }
 0x16e   : > { %v1293_v50 = vsel %vm4079_vm12, %v1285_v30, 0.0  ;;  %v1275_v25 = vmul.f32 0.6931472, %v2096_v37  ;;  %v1281_v13 = vadd.f32 %v1271_v15, %v2736_v45  ;;  %vm4080_vm0 = vcmp.lt.s32.totalorder %v2624_v57, 9216  ;;  %vm4083_vm9 = vmmov %vm4079_vm12  ;;  %s3804_s20 = scalar_lea.hbm %s4086_s2, %s1766_s4  ;;  %p2184_p1 = pneg %p2183_p0 }
 0x16f   : > { %v1294_v36 = vsel %vm4080_vm0, %v1286_v17, 0.0  ;;  %v1300_v41 = vadd.f32 %v1293_v50, %v1292_v33  ;;  %v1282_v40 = vadd.f32 %v1273_v34, %v2740_v55  ;;  %v1288_v46 = vsub.f32 %v1280_v59, %v1254_v53  ;;  %vm4084_vm2 = vmmov %vm4080_vm0  ;;  %p2190_p7 = por %p2189_p6, %p2188_p4 }
 0x170   : > { %vm4081_vm13 = vcmp.lt.s32.totalorder %v2629_v60, 9216  ;;  %v1283_v42 = vadd.f32 %v1275_v25, %v2742_v63  ;;  %v1289_v14 = vsub.f32 %v1281_v13, %v3638_v58 }
 0x171   : > { %v1295_v49 = vsel %vm4081_vm13, %v1287_v11, 0.0  ;;  %v1301_v0 = vadd.f32 %v1300_v41, %v1294_v36  ;;  %v1290_v45 = vsub.f32 %v1282_v40, %v3644_v48  ;;  %v1296_v47 = vsel %vm4082_vm7, %v1288_v46, 0.0  ;;  %vm4085_vm15 = vmmov %vm4081_vm13  ;;  %p2191_p8 = pnand %p2190_p7, %p2184_p1 }
 0x172   : > { %v1291_v55 = vsub.f32 %v1283_v42, %v3653_v9  ;;  %v1297_v19 = vsel %vm4083_vm9, %v1289_v14, 0.0 }
 0x173   : > { %v1302_v24 = vadd.f32 %v1301_v0, %v1295_v49  ;;  %v1298_v63 = vsel %vm4084_vm2, %v1290_v45, 0.0  ;;  %v1303_v58 = vadd.f32 %v1297_v19, %v1296_v47 }
 0x174   : > { %v1299_v48 = vsel %vm4085_vm15, %v1291_v55, 0.0 }
 0x175   : > { %v1306_v16 = vadd.f32 %v1302_v24, %v1258_v7  ;;  %v1304_v52 = vadd.f32 %v1303_v58, %v1298_v63 }
 0x177   : > { %1308 = vst [vmem:[%s2522_s13] sm:$0xff] %v1306_v16  ;;  %v1305_v9 = vadd.f32 %v1304_v52, %v1299_v48 }
 0x179   : > { %v1307_v56 = vadd.f32 %v1305_v9, %v1259_v18 }
 0x17b   : > { %1309 = vst [vmem:[%s2522_s13 + $0x8] sm:$0xff] %v1307_v56 }
 0x17c   : > { %2194 = shalt.err (!%p2191_p8)
}
 0x17d   : > { %s2195_s13 = scalar_lea.hbm %s3804_s20, 256  ;;  %s2199_s8 = scalar_lea.hbm %s4086_s2, 512 }
 0x17e   : > { %p2196_p10 = scmp.ne.s32.totalorder %s3804_s20, %s2195_s13  ;;  %p2200_p12 = scmp.lt.u32.totalorder %s3804_s20, %s4086_s2 }
 0x17f   : > { %p2201_p13 = scmp.lt.u32.totalorder %s2199_s8, %s2195_s13  ;;  %p2203_p0 = scmp.lt.u32.totalorder %s2195_s13, %s3804_s20 }
 0x180   : > { %p2197_p5 = pnand %p2196_p10, %p2469_p2 }
 0x181   : > { %p2202_p9 = por %p2201_p13, %p2200_p12 }
 0x182   : > { %p2198_p11 = pneg %p2197_p5 }
 0x183   : > { %p2204_p1 = por %p2203_p0, %p2202_p9 }
 0x185   : > { %p2205_p4 = pnand %p2204_p1, %p2198_p11 }
 0x187   : > { %2208 = shalt.err (!%p2205_p4)
}
 0x188   : > { %1832 = dma.vmem_to_hbm [thread:$0]  (%p2469_p2), %s3806_s7, 256, %s3804_s20, %s1326_s5, %s2330_s10, %s2330_s10, %s2331_s24  }
 0x189 PF: > { %s4087_s9 = sld [smem:[#allocation22_spill]]  ;;  %p1850_p6 = scmp.ge.s32.totalorder %s2315_s28, 2 }
 0x18b   : > { %p1838_p7 = pnand %p1850_p6, %p2473_p3 }
 0x18f   : > { %s1402_s27 = sand.u32 1, %s4087_s9  }
 0x190   : > { %s1403_s11 = scalar_lea.sflag [#allocation4], %s1402_s27 }
 0x191   : > { %2262 = dma.done.wait (!%p1838_p7), %s1403_s11, 1024  }
 0x192   : > { %2264 = vsyncadd (!%p1838_p7), %s1403_s11, 4294966272  ;;  %s4089_s12 = sadd.s32 4294967294, %s2315_s28  }
 0x193   : > { %s1411_s26 = sand.u32 1, %s4089_s12  }
 0x194   : > { %s1412_s25 = scalar_lea.sflag [#allocation9], %s1411_s26 }
 0x195   : > { %2266 = dma.done.wait (!%p1838_p7), %s1412_s25, 2048  }
 0x196   : > { %2268 = vsyncadd (!%p1838_p7), %s1412_s25, 4294965248  ;;  %s1430_s18 = scalar_lea.sflag [#allocation12], %s1402_s27 }
 0x197   : > { %2270 = dma.done.wait (!%p1838_p7), %s1430_s18, 256  }
 0x198   : > { %2272 = vsyncadd (!%p1838_p7), %s1430_s18, 4294967040  ;;  %s31_s28 = sadd.s32 1, %s2315_s28   ;;  %s4090_s10 = sld [smem:[#allocation23_spill]] }
 0x199   : > { %p28_p2 = scmp.ge.s32.totalorder %s31_s28, 6   ;;  %s4091_s20 = sld [smem:[#allocation28_spill]] }
 0x19a   : > { %s4092_s24 = sld [smem:[#allocation29_spill]]  ;;  %s4093_s7 = sld [smem:[#allocation24_spill]] }
 0x19b   : > { %s4094_s25 = sld [smem:[#allocation25_spill]]  ;;  %s4095_s26 = sld [smem:[#allocation26_spill]] }
 0x19c   : > { %s4096_s27 = sld [smem:[#allocation27_spill]]  ;;  %s4097_s18 = smov %s2279_s19 }
 0x19d   : > { %s4099_s21 = smov %s2291_s22  ;;  %s4100_s22 = smov %s2295_s23 }
 0x19e   : > { %s4098_s19 = smov %s4090_s10  ;;  %30 = sbr.rel (!%p28_p2) target bundleno = 19 (0x13), region = 161 }
 0x1a0   : > { %s4101_s23 = smov %s4092_s24  ;;  %s4102_s24 = smov %s4093_s7 }
 0x1a5   :  { %1435 = vsyncpa [#allocation3], 1 }
 0x1a6   :  { %1437 = vsyncpa [#allocation3 + $0x1], 1 }
 0x1a7   :  { %1438 = vsyncpa [#allocation6], 1 }
 0x1a8   :  { %1440 = vsyncpa [#allocation6 + $0x1], 1 }
 0x1a9   :  { %1441 = vsyncpa [#allocation4], 1 }
 0x1aa   :  { %1443 = vsyncpa [#allocation4 + $0x1], 1 }
 0x1ab   :  { %1444 = vsyncpa [#allocation9], 1 }
 0x1ac   :  { %1446 = vsyncpa [#allocation9 + $0x1], 1 }
 0x1ad   :  { %1447 = vsyncpa [#allocation12], 1 }
 0x1ae   :  { %1449 = vsyncpa [#allocation12 + $0x1], 1 }

</bundles_post_ra>
